<compile_context>
chip_gen: v5e
topology: v5e:2x2
jax: 0.10.0
libtpu: 0.0.40
codegen_flags: <defaults>
</compile_context>

<pallas_src>
import functools

import jax
import jax.numpy as jnp
from jax.experimental import pallas as pl
from jax.experimental.pallas import tpu as pltpu


def _round_up(x, m):
    return ((x + m - 1) // m) * m


def _triplet_kernel(xi_ref, xj_ref, tci_ref, trj_ref, sqi_ref, sqj_ref,
                    dist_ref, loss_ref, ap2_ref, an2_ref, *,
                    margin: float, n_valid: int, bi: int, bj: int):
    i = pl.program_id(0)
    j = pl.program_id(1)

    @pl.when(j == 0)
    def _init():
        ap2_ref[...] = jnp.full((bi, 1), -jnp.inf, jnp.float32)
        an2_ref[...] = jnp.full((bi, 1), jnp.inf, jnp.float32)

    xi = xi_ref[...]                                   # (bi, d) f32
    xj = xj_ref[...]                                   # (bj, d) f32

    # Gram block on the MXU: g[a, b] = <xi_a, xj_b>  ("NT" matmul).
    g = jax.lax.dot_general(
        xi, xj, dimension_numbers=(((1,), (1,)), ((), ())),
        preferred_element_type=jnp.float32)            # (bi, bj)

    # Squared euclidean distances; clamp against cancellation.
    d2 = sqi_ref[...] + sqj_ref[...] - 2.0 * g         # (bi,1)+(1,bj)-(bi,bj)
    d2 = jnp.maximum(d2, 0.0)

    # Global row / col ids: exact-zero diagonal + padding masks (cheap VPU).
    row_ids = i * bi + jax.lax.broadcasted_iota(jnp.int32, (bi, bj), 0)
    col_ids = j * bj + jax.lax.broadcasted_iota(jnp.int32, (bi, bj), 1)
    d2 = jnp.where(row_ids == col_ids, 0.0, d2)

    # Lane-dense (bi, bj) dist tile writeback (module returns dist).
    dist_ref[...] = jnp.sqrt(d2)

    # Online hard mining on squared distances (sqrt is monotonic).
    col_valid = col_ids < n_valid
    same = tci_ref[...] == trj_ref[...]                # (bi,1)==(1,bj) -> (bi,bj)
    ap_cand = jnp.where(same & col_valid, d2, -jnp.inf)
    an_cand = jnp.where(jnp.logical_and(jnp.logical_not(same), col_valid),
                        d2, jnp.inf)
    ap2_ref[...] = jnp.maximum(ap2_ref[...],
                               jnp.max(ap_cand, axis=1, keepdims=True))
    an2_ref[...] = jnp.minimum(an2_ref[...],
                               jnp.min(an_cand, axis=1, keepdims=True))

    @pl.when(j == pl.num_programs(1) - 1)
    def _finalize():
        d_ap = jnp.sqrt(jnp.maximum(ap2_ref[...], 0.0))   # (bi, 1)
        d_an = jnp.sqrt(an2_ref[...])                     # +inf -> hinge 0
        hinge = jnp.maximum(d_ap - d_an + jnp.float32(margin), 0.0)
        row_valid = (i * bi
                     + jax.lax.broadcasted_iota(jnp.int32, (bi, 1), 0)) < n_valid
        loss_ref[...] = jnp.where(row_valid, hinge, 0.0)


def triplet_loss(inputs, targets, margin: float = 0.3,
                 block_rows: int = 256, block_cols: int = 256):
    """inputs: (n, d) float features; targets: (n,) int labels.
    Returns (loss, dist) matching TripletLoss.forward."""
    n, d = inputs.shape
    x = inputs.astype(jnp.float32)
    t = targets.astype(jnp.int32)

    # Lane-dense tiles; 256 feeds the v6e/v7x MXU fully, 128 for small batches.
    bi = block_rows if n > 128 else 128
    bj = block_cols if n > 128 else 128
    n_pad = _round_up(n, max(bi, bj))

    x_p = jnp.zeros((n_pad, d), jnp.float32).at[:n, :].set(x)
    t_p = jnp.zeros((n_pad,), jnp.int32).at[:n].set(t)
    sq = jnp.sum(x_p * x_p, axis=1)                    # O(n*d), trivial

    t_col = t_p.reshape(n_pad, 1)
    t_row = t_p.reshape(1, n_pad)
    sq_col = sq.reshape(n_pad, 1)
    sq_row = sq.reshape(1, n_pad)

    kernel = functools.partial(_triplet_kernel, margin=float(margin),
                               n_valid=n, bi=bi, bj=bj)

    grid = (n_pad // bi, n_pad // bj)

    # Rough per-step VMEM need (double-buffered inputs + dist tiles); keep the
    # scoped limit within every generation's physical VMEM (v7x: 64 MiB/TC).
    est = 4 * (2 * (bi * d + bj * d) + 2 * bi * bj + 8 * (bi + bj) * 128)
    vmem_limit = int(max(32 * 1024 * 1024, min(2 * est, 48 * 1024 * 1024)))

    dist_pad, per_row = pl.pallas_call(
        kernel,
        out_shape=(
            jax.ShapeDtypeStruct((n_pad, n_pad), jnp.float32),  # dist
            jax.ShapeDtypeStruct((n_pad, 1), jnp.float32),      # per-row hinge
        ),
        grid_spec=pltpu.PrefetchScalarGridSpec(
            num_scalar_prefetch=0,
            grid=grid,
            in_specs=[
                pl.BlockSpec((bi, d), lambda i, j: (i, 0)),    # x rows
                pl.BlockSpec((bj, d), lambda i, j: (j, 0)),    # x cols
                pl.BlockSpec((bi, 1), lambda i, j: (i, 0)),    # targets col
                pl.BlockSpec((1, bj), lambda i, j: (0, j)),    # targets row
                pl.BlockSpec((bi, 1), lambda i, j: (i, 0)),    # |x|^2 col
                pl.BlockSpec((1, bj), lambda i, j: (0, j)),    # |x|^2 row
            ],
            out_specs=(
                pl.BlockSpec((bi, bj), lambda i, j: (i, j)),
                pl.BlockSpec((bi, 1), lambda i, j: (i, 0)),
            ),
            scratch_shapes=[
                pltpu.VMEM((bi, 1), jnp.float32),   # ap^2 accumulator
                pltpu.VMEM((bi, 1), jnp.float32),   # an^2 accumulator
            ],
        ),
        compiler_params=pltpu.CompilerParams(
            dimension_semantics=("parallel", "arbitrary"),
            vmem_limit_bytes=vmem_limit,
        ),
    )(x_p, x_p, t_col, t_row, sq_col, sq_row)

    loss = jnp.sum(per_row) * jnp.float32(1.0 / n)     # mean over real rows
    dist = dist_pad[:n, :n]
    return loss, dist


def _reference(inputs, targets, margin=0.3):
    # Pure-JAX reference mirroring the PyTorch forward (exact-diff cdist).
    diff = inputs[:, None, :] - inputs[None, :, :]
    dist = jnp.sqrt(jnp.sum(diff * diff, axis=-1))
    mask = targets[:, None] == targets[None, :]
    dist_ap = jnp.max(jnp.where(mask, dist, -jnp.inf), axis=1)
    dist_an = jnp.min(jnp.where(mask, jnp.inf, dist), axis=1)
    loss = jnp.mean(jnp.maximum(dist_ap - dist_an + margin, 0.0))
    return loss, dist


if __name__ == "__main__":
    key = jax.random.PRNGKey(0)
    n, d = 8, 128                                    # batch_size, feat_dim
    inputs = jax.random.normal(key, (n, d), dtype=jnp.float32)
    # 4 classes x 2 samples -> every row has >=1 positive and >=1 negative
    targets = jnp.array([0, 0, 1, 1, 2, 2, 3, 3], dtype=jnp.int32)

    loss, dist = triplet_loss(inputs, targets, margin=0.3)
    jax.block_until_ready((loss, dist))

    ref_loss, ref_dist = _reference(inputs, targets, margin=0.3)
    # Tolerance accounts for the MXU Gram-matrix reformulation vs the
    # exact-difference reference (review-accepted numerics caveat).
    assert jnp.allclose(dist, ref_dist, atol=1e-2, rtol=1e-2)
    assert jnp.allclose(loss, ref_loss, atol=1e-2, rtol=1e-2)

    print("KERNEL_OK")
</pallas_src>

<mosaic_0001>
module attributes {stable_mosaic.version = 11 : i64} {
  func.func @_triplet_kernel(%arg0: i32, %arg1: i32, %arg2: memref<128x128xf32, #tpu.memory_space<vmem>>, %arg3: memref<128x128xf32, #tpu.memory_space<vmem>>, %arg4: memref<128x1xi32, #tpu.memory_space<vmem>>, %arg5: memref<1x128xi32, #tpu.memory_space<vmem>>, %arg6: memref<128x1xf32, #tpu.memory_space<vmem>>, %arg7: memref<1x128xf32, #tpu.memory_space<vmem>>, %arg8: memref<128x128xf32, #tpu.memory_space<vmem>>, %arg9: memref<128x1xf32, #tpu.memory_space<vmem>>, %arg10: memref<128x1xf32, #tpu.memory_space<vmem>>, %arg11: memref<128x1xf32, #tpu.memory_space<vmem>>) attributes {dimension_semantics = [#tpu.dimension_semantics<parallel>, #tpu.dimension_semantics<arbitrary>], iteration_bounds = array<i64: 1, 1>, scalar_prefetch = 0 : i64, scratch_operands = 2 : i64, tpu.core_type = #tpu.core_type<tc>, window_params = [{transform_indices = @transform_0, window_bounds = array<i64: 128, 128>}, {transform_indices = @transform_1, window_bounds = array<i64: 128, 128>}, {transform_indices = @transform_2, window_bounds = array<i64: 128, 1>}, {transform_indices = @transform_3, window_bounds = array<i64: 1, 128>}, {transform_indices = @transform_4, window_bounds = array<i64: 128, 1>}, {transform_indices = @transform_5, window_bounds = array<i64: 1, 128>}, {transform_indices = @transform_6, window_bounds = array<i64: 128, 128>}, {transform_indices = @transform_7, window_bounds = array<i64: 128, 1>}]} {
    %c0_i32 = arith.constant 0 : i32
    %0 = arith.cmpi eq, %arg1, %c0_i32 : i32
    %1 = arith.extui %0 : i1 to i32
    %c0_i32_0 = arith.constant 0 : i32
    %2 = arith.cmpi ne, %1, %c0_i32_0 : i32
    scf.if %2 {
      %cst_33 = arith.constant 0xFF800000 : f32
      %56 = vector.broadcast %cst_33 : f32 to vector<128x1xf32>
      %c0_34 = arith.constant 0 : index
      %c0_35 = arith.constant 0 : index
      %57 = vector.load %arg10[%c0_34, %c0_35] : memref<128x1xf32, #tpu.memory_space<vmem>>, vector<128x1xf32>
      tpu.vector_store %arg10[%c0_34, %c0_35], %56 {strides = array<i32>} : memref<128x1xf32, #tpu.memory_space<vmem>>, vector<128x1xf32>,
      %cst_36 = arith.constant 0x7F800000 : f32
      %58 = vector.broadcast %cst_36 : f32 to vector<128x1xf32>
      %c0_37 = arith.constant 0 : index
      %c0_38 = arith.constant 0 : index
      %59 = vector.load %arg11[%c0_37, %c0_38] : memref<128x1xf32, #tpu.memory_space<vmem>>, vector<128x1xf32>
      tpu.vector_store %arg11[%c0_37, %c0_38], %58 {strides = array<i32>} : memref<128x1xf32, #tpu.memory_space<vmem>>, vector<128x1xf32>,
    } else {
    }
    %c0 = arith.constant 0 : index
    %c0_1 = arith.constant 0 : index
    %3 = vector.load %arg2[%c0, %c0_1] : memref<128x128xf32, #tpu.memory_space<vmem>>, vector<128x128xf32>
    %c0_2 = arith.constant 0 : index
    %c0_3 = arith.constant 0 : index
    %4 = vector.load %arg3[%c0_2, %c0_3] : memref<128x128xf32, #tpu.memory_space<vmem>>, vector<128x128xf32>
    %cst = arith.constant dense<0.000000e+00> : vector<128x128xf32>
    %5 = tpu.matmul %3, %4, %cst {dimension_numbers = #tpu.dot_dimension_numbers<[1], [1], [0], [0], [0, 0, 1, 0], [], []>} : vector<128x128xf32>, vector<128x128xf32>, vector<128x128xf32> -> vector<128x128xf32>
    %c0_4 = arith.constant 0 : index
    %c0_5 = arith.constant 0 : index
    %6 = vector.load %arg6[%c0_4, %c0_5] : memref<128x1xf32, #tpu.memory_space<vmem>>, vector<128x1xf32>
    %c0_6 = arith.constant 0 : index
    %c0_7 = arith.constant 0 : index
    %7 = vector.load %arg7[%c0_6, %c0_7] : memref<1x128xf32, #tpu.memory_space<vmem>>, vector<1x128xf32>
    %8 = vector.broadcast %6 : vector<128x1xf32> to vector<128x128xf32>
    %9 = vector.broadcast %7 : vector<1x128xf32> to vector<128x128xf32>
    %10 = arith.addf %8, %9 : vector<128x128xf32>
    %cst_8 = arith.constant 2.000000e+00 : f32
    %11 = vector.broadcast %cst_8 : f32 to vector<128x128xf32>
    %12 = arith.mulf %11, %5 : vector<128x128xf32>
    %13 = arith.subf %10, %12 : vector<128x128xf32>
    %cst_9 = arith.constant 0.000000e+00 : f32
    %14 = vector.broadcast %cst_9 : f32 to vector<128x128xf32>
    %15 = arith.maximumf %13, %14 : vector<128x128xf32>
    %c128_i32 = arith.constant 128 : i32
    %16 = arith.muli %arg0, %c128_i32 : i32
    %17 = tpu.iota {dimensions = array<i32: 0>} : vector<128x128xi32>
    %18 = vector.broadcast %16 : i32 to vector<128x128xi32>
    %19 = arith.addi %18, %17 : vector<128x128xi32>
    %c128_i32_10 = arith.constant 128 : i32
    %20 = arith.muli %arg1, %c128_i32_10 : i32
    %21 = tpu.iota {dimensions = array<i32: 1>} : vector<128x128xi32>
    %22 = vector.broadcast %20 : i32 to vector<128x128xi32>
    %23 = arith.addi %22, %21 : vector<128x128xi32>
    %24 = arith.cmpi eq, %19, %23 : vector<128x128xi32>
    %cst_11 = arith.constant 0.000000e+00 : f32
    %25 = vector.broadcast %cst_11 : f32 to vector<128x128xf32>
    %26 = arith.select %24, %25, %15 : vector<128x128xi1>, vector<128x128xf32>
    %27 = math.sqrt %26 : vector<128x128xf32>
    %c0_12 = arith.constant 0 : index
    %c0_13 = arith.constant 0 : index
    %28 = vector.load %arg8[%c0_12, %c0_13] : memref<128x128xf32, #tpu.memory_space<vmem>>, vector<128x128xf32>
    tpu.vector_store %arg8[%c0_12, %c0_13], %27 {strides = array<i32>} : memref<128x128xf32, #tpu.memory_space<vmem>>, vector<128x128xf32>,
    %c8_i32 = arith.constant 8 : i32
    %29 = vector.broadcast %c8_i32 : i32 to vector<128x128xi32>
    %30 = arith.cmpi slt, %23, %29 : vector<128x128xi32>
    %c0_14 = arith.constant 0 : index
    %c0_15 = arith.constant 0 : index
    %31 = vector.load %arg4[%c0_14, %c0_15] : memref<128x1xi32, #tpu.memory_space<vmem>>, vector<128x1xi32>
    %c0_16 = arith.constant 0 : index
    %c0_17 = arith.constant 0 : index
    %32 = vector.load %arg5[%c0_16, %c0_17] : memref<1x128xi32, #tpu.memory_space<vmem>>, vector<1x128xi32>
    %33 = vector.broadcast %31 : vector<128x1xi32> to vector<128x128xi32>
    %34 = vector.broadcast %32 : vector<1x128xi32> to vector<128x128xi32>
    %35 = arith.cmpi eq, %33, %34 : vector<128x128xi32>
    %36 = arith.andi %35, %30 : vector<128x128xi1>
    %cst_18 = arith.constant 0xFF800000 : f32
    %37 = vector.broadcast %cst_18 : f32 to vector<128x128xf32>
    %38 = arith.select %36, %26, %37 : vector<128x128xi1>, vector<128x128xf32>
    %cst_19 = arith.constant dense<true> : vector<128x128xi1>
    %39 = arith.xori %35, %cst_19 : vector<128x128xi1>
    %40 = arith.andi %39, %30 : vector<128x128xi1>
    %cst_20 = arith.constant 0x7F800000 : f32
    %41 = vector.broadcast %cst_20 : f32 to vector<128x128xf32>
    %42 = arith.select %40, %26, %41 : vector<128x128xi1>, vector<128x128xf32>
    %c0_21 = arith.constant 0 : index
    %c0_22 = arith.constant 0 : index
    %43 = vector.load %arg10[%c0_21, %c0_22] : memref<128x1xf32, #tpu.memory_space<vmem>>, vector<128x1xf32>
    %cst_23 = arith.constant dense<0xFF800000> : vector<128xf32>
    %44 = vector.multi_reduction <maximumf>, %38, %cst_23 [1] : vector<128x128xf32> to vector<128xf32>
    %45 = vector.shape_cast %44 : vector<128xf32> to vector<128x1xf32>
    %46 = arith.maximumf %43, %45 : vector<128x1xf32>
    %c0_24 = arith.constant 0 : index
    %c0_25 = arith.constant 0 : index
    %47 = vector.load %arg10[%c0_24, %c0_25] : memref<128x1xf32, #tpu.memory_space<vmem>>, vector<128x1xf32>
    tpu.vector_store %arg10[%c0_24, %c0_25], %46 {strides = array<i32>} : memref<128x1xf32, #tpu.memory_space<vmem>>, vector<128x1xf32>,
    %c0_26 = arith.constant 0 : index
    %c0_27 = arith.constant 0 : index
    %48 = vector.load %arg11[%c0_26, %c0_27] : memref<128x1xf32, #tpu.memory_space<vmem>>, vector<128x1xf32>
    %cst_28 = arith.constant dense<0x7F800000> : vector<128xf32>
    %49 = vector.multi_reduction <minimumf>, %42, %cst_28 [1] : vector<128x128xf32> to vector<128xf32>
    %50 = vector.shape_cast %49 : vector<128xf32> to vector<128x1xf32>
    %51 = arith.minimumf %48, %50 : vector<128x1xf32>
    %c0_29 = arith.constant 0 : index
    %c0_30 = arith.constant 0 : index
    %52 = vector.load %arg11[%c0_29, %c0_30] : memref<128x1xf32, #tpu.memory_space<vmem>>, vector<128x1xf32>
    tpu.vector_store %arg11[%c0_29, %c0_30], %51 {strides = array<i32>} : memref<128x1xf32, #tpu.memory_space<vmem>>, vector<128x1xf32>,
    %c0_i32_31 = arith.constant 0 : i32
    %53 = arith.cmpi eq, %arg1, %c0_i32_31 : i32
    %54 = arith.extui %53 : i1 to i32
    %c0_i32_32 = arith.constant 0 : i32
    %55 = arith.cmpi ne, %54, %c0_i32_32 : i32
    scf.if %55 {
      %c0_33 = arith.constant 0 : index
      %c0_34 = arith.constant 0 : index
      %56 = vector.load %arg10[%c0_33, %c0_34] : memref<128x1xf32, #tpu.memory_space<vmem>>, vector<128x1xf32>
      %cst_35 = arith.constant 0.000000e+00 : f32
      %57 = vector.broadcast %cst_35 : f32 to vector<128x1xf32>
      %58 = arith.maximumf %56, %57 : vector<128x1xf32>
      %59 = math.sqrt %58 : vector<128x1xf32>
      %c0_36 = arith.constant 0 : index
      %c0_37 = arith.constant 0 : index
      %60 = vector.load %arg11[%c0_36, %c0_37] : memref<128x1xf32, #tpu.memory_space<vmem>>, vector<128x1xf32>
      %61 = math.sqrt %60 : vector<128x1xf32>
      %62 = arith.subf %59, %61 : vector<128x1xf32>
      %cst_38 = arith.constant 3.000000e-01 : f32
      %63 = vector.broadcast %cst_38 : f32 to vector<128x1xf32>
      %64 = arith.addf %62, %63 : vector<128x1xf32>
      %cst_39 = arith.constant 0.000000e+00 : f32
      %65 = vector.broadcast %cst_39 : f32 to vector<128x1xf32>
      %66 = arith.maximumf %64, %65 : vector<128x1xf32>
      %c128_i32_40 = arith.constant 128 : i32
      %67 = arith.muli %arg0, %c128_i32_40 : i32
      %68 = tpu.iota {dimensions = array<i32: 0>} : vector<128x1xi32>
      %69 = vector.broadcast %67 : i32 to vector<128x1xi32>
      %70 = arith.addi %69, %68 : vector<128x1xi32>
      %c8_i32_41 = arith.constant 8 : i32
      %71 = vector.broadcast %c8_i32_41 : i32 to vector<128x1xi32>
      %72 = arith.cmpi slt, %70, %71 : vector<128x1xi32>
      %cst_42 = arith.constant 0.000000e+00 : f32
      %73 = vector.broadcast %cst_42 : f32 to vector<128x1xf32>
      %74 = arith.select %72, %66, %73 : vector<128x1xi1>, vector<128x1xf32>
      %c0_43 = arith.constant 0 : index
      %c0_44 = arith.constant 0 : index
      %75 = vector.load %arg9[%c0_43, %c0_44] : memref<128x1xf32, #tpu.memory_space<vmem>>, vector<128x1xf32>
      tpu.vector_store %arg9[%c0_43, %c0_44], %74 {strides = array<i32>} : memref<128x1xf32, #tpu.memory_space<vmem>>, vector<128x1xf32>,
    } else {
    }
    return
  }
  func.func @transform_0(%arg0: i32, %arg1: i32) -> (i32, i32) {
    %c0_i32 = arith.constant 0 : i32
    %c0_i32_0 = arith.constant 0 : i32
    return %arg0, %c0_i32 : i32, i32
  }
  func.func @transform_1(%arg0: i32, %arg1: i32) -> (i32, i32) {
    %c0_i32 = arith.constant 0 : i32
    %c0_i32_0 = arith.constant 0 : i32
    return %arg1, %c0_i32 : i32, i32
  }
  func.func @transform_2(%arg0: i32, %arg1: i32) -> (i32, i32) {
    %c0_i32 = arith.constant 0 : i32
    %c0_i32_0 = arith.constant 0 : i32
    return %arg0, %c0_i32 : i32, i32
  }
  func.func @transform_3(%arg0: i32, %arg1: i32) -> (i32, i32) {
    %c0_i32 = arith.constant 0 : i32
    %c0_i32_0 = arith.constant 0 : i32
    return %c0_i32, %arg1 : i32, i32
  }
  func.func @transform_4(%arg0: i32, %arg1: i32) -> (i32, i32) {
    %c0_i32 = arith.constant 0 : i32
    %c0_i32_0 = arith.constant 0 : i32
    return %arg0, %c0_i32 : i32, i32
  }
  func.func @transform_5(%arg0: i32, %arg1: i32) -> (i32, i32) {
    %c0_i32 = arith.constant 0 : i32
    %c0_i32_0 = arith.constant 0 : i32
    return %c0_i32, %arg1 : i32, i32
  }
  func.func @transform_6(%arg0: i32, %arg1: i32) -> (i32, i32) {
    %c0_i32 = arith.constant 0 : i32
    return %arg0, %arg1 : i32, i32
  }
  func.func @transform_7(%arg0: i32, %arg1: i32) -> (i32, i32) {
    %c0_i32 = arith.constant 0 : i32
    %c0_i32_0 = arith.constant 0 : i32
    return %arg0, %c0_i32 : i32, i32
  }
}

</mosaic_0001>

<bundles_post_ra>
// kernel: tpu_custom_call.1
= control target key start
LH: loop header
LB: loop body
LE: loop exit
PB: predicated region body
PF: predicated region fallthrough
CT: control target
= control target key end

     0   :  { %v1604_v1 = vmov 0   ;;  %s2662_s0 = inlined_call_operand.vmem [shape: f32[128,128], index: 0, kind: input, shape index: {}]   ;;  %s2663_s1 = inlined_call_operand.vmem [shape: f32[128,128], index: 1, kind: input, shape index: {}]   ;;  %s2664_s2 = inlined_call_operand.vmem [shape: s32[128,1], index: 2, kind: input, shape index: {}]   ;;  %s2665_s3 = inlined_call_operand.vmem [shape: s32[1,128], index: 3, kind: input, shape index: {}]   ;;  %s2666_s4 = inlined_call_operand.vmem [shape: f32[128,1], index: 4, kind: input, shape index: {}]   ;;  %s2667_s5 = inlined_call_operand.vmem [shape: f32[1,128], index: 5, kind: input, shape index: {}]   ;;  %s2668_s6 = inlined_call_operand.hbm [shape: f32[128,128], index: 6, kind: output, shape index: {0}]   ;;  %s2669_s7 = inlined_call_operand.vmem [shape: f32[128,1], index: 7, kind: output, shape index: {1}]  }
   0x1   :  { %v94_v0 = vld [vmem:[%s2663_s1 + $0x78] sm:$0xff]  ;;  %1539 = vset.pattern.permute.xlu2 %v1604_v1  ;;  %1538 = vset.pattern.permute.xlu1 %v1604_v1  ;;  %v164_v2 = vld [vmem:[%s2666_s4 + $0x20] sm:$0xff]  ;;  %v162_v3 = vld [vmem:[%s2666_s4 + $0x10] sm:$0xff] }
   0x2   :  { %1537 = vset.pattern.permute.xlu0 %v1604_v1  ;;  %95 = vmatpush.xpose.msra.mxu0 %v94_v0  ;;  %v160_v4 = vld [vmem:[%s2666_s4] sm:$0xff]  ;;  %v93_v5 = vld [vmem:[%s2663_s1 + $0x70] sm:$0xff]  ;;  %v92_v6 = vld [vmem:[%s2663_s1 + $0x68] sm:$0xff] }
   0x3   :  { %1481 = vmatpush.xpose.msra.mxu1 %v94_v0  ;;  %1482 = vmatpush.xpose.msra.mxu2 %v94_v0  ;;  %v165_v7 = vld [vmem:[%s2666_s4 + $0x28] sm:$0xff] }
   0x4   :  { %1483 = vmatpush.xpose.msra.mxu3 %v94_v0  ;;  %199 = vperm.xlu2 %1539, %v164_v2  }
   0x5   :  { %189 = vperm.xlu1 %1538, %v162_v3   ;;  %179 = vperm.xlu0 %1537, %v160_v4  }
   0x6   :  { %96 = vmatpush.xpose.msra.mxu0 %v93_v5 }
   0x7   :  { %1484 = vmatpush.xpose.msra.mxu1 %v93_v5  ;;  %1485 = vmatpush.xpose.msra.mxu2 %v93_v5 }
   0x8   :  { %1486 = vmatpush.xpose.msra.mxu3 %v93_v5 }
   0x9   :  { %13 = vsyncpa [#allocation5], 0  ;;  %v163_v8 = vld [vmem:[%s2666_s4 + $0x18] sm:$0xff]  ;;  %v161_v9 = vld [vmem:[%s2666_s4 + $0x8] sm:$0xff]  ;;  %vm1605_vm4 = vmmov 1   ;;  %s1465_s11 = sshll.u32 %s2668_s6, 4  ;;  %s1466_s11 = int_to_ptr.hbm [resolvable:$true] %s1465_s11 }
   0xa   :  { %97 = vmatpush.xpose.msra.mxu0 %v92_v6  ;;  %v91_v10 = vld [vmem:[%s2663_s1 + $0x60] sm:$0xff]  ;;  %v90_v11 = vld [vmem:[%s2663_s1 + $0x58] sm:$0xff]  ;;  %v166_v14 = vld [vmem:[%s2666_s4 + $0x30] sm:$0xff]  ;;  %s1608_s12 = smov [#allocation4]   ;;  %s1609_s14 = smov 128  }
   0xb   :  { %1487 = vmatpush.xpose.msra.mxu1 %v92_v6  ;;  %1488 = vmatpush.xpose.msra.mxu2 %v92_v6  ;;  %v168_v12 = vld [vmem:[%s2666_s4 + $0x40] sm:$0xff]  ;;  %v167_v13 = vld [vmem:[%s2666_s4 + $0x38] sm:$0xff]  ;;  %v89_v15 = vld [vmem:[%s2663_s1 + $0x50] sm:$0xff]  ;;  %s1463_s13 = sshll.u32 %s1608_s12, 4  ;;  %s1610_s15 = smov 8   ;;  %s1464_s13 = int_to_ptr.vmem [resolvable:$true] %s1463_s13 }
   0xc   :  { %1489 = vmatpush.xpose.msra.mxu3 %v92_v6  ;;  %204 = vperm.xlu2 %1539, %v165_v7   ;;  %v88_v16 = vld [vmem:[%s2663_s1 + $0x48] sm:$0xff]  ;;  %v171_v17 = vld [vmem:[%s2666_s4 + $0x58] sm:$0xff]  ;;  %v170_v18 = vld [vmem:[%s2666_s4 + $0x50] sm:$0xff] }
   0xd   :  { %194 = vperm.xlu1 %1538, %v163_v8   ;;  %184 = vperm.xlu0 %1537, %v161_v9   ;;  %v169_v19 = vld [vmem:[%s2666_s4 + $0x48] sm:$0xff]  ;;  %v87_v20 = vld [vmem:[%s2663_s1 + $0x40] sm:$0xff]  ;;  %v86_v21 = vld [vmem:[%s2663_s1 + $0x38] sm:$0xff] }
   0xe   :  { %98 = vmatpush.xpose.msra.mxu0 %v91_v10  ;;  %v174_v22 = vld [vmem:[%s2666_s4 + $0x70] sm:$0xff]  ;;  %v173_v23 = vld [vmem:[%s2666_s4 + $0x68] sm:$0xff]  ;;  %v172_v24 = vld [vmem:[%s2666_s4 + $0x60] sm:$0xff] }
   0xf   :  { %1490 = vmatpush.xpose.msra.mxu1 %v91_v10  ;;  %1491 = vmatpush.xpose.msra.mxu2 %v91_v10  ;;  %v85_v25 = vld [vmem:[%s2663_s1 + $0x30] sm:$0xff]  ;;  %v84_v26 = vld [vmem:[%s2663_s1 + $0x28] sm:$0xff]  ;;  %v605_v28 = vld [vmem:[%s2664_s2] sm:$0xff] }
  0x10   :  { %1492 = vmatpush.xpose.msra.mxu3 %v91_v10  ;;  %v606_v27 = vld [vmem:[%s2664_s2 + $0x8] sm:$0xff]  ;;  %v175_v29 = vld [vmem:[%s2666_s4 + $0x78] sm:$0xff]  ;;  %v83_v30 = vld [vmem:[%s2663_s1 + $0x20] sm:$0xff] }
  0x11   :  { %v82_v31 = vld [vmem:[%s2663_s1 + $0x18] sm:$0xff]  ;;  %v609_v32 = vld [vmem:[%s2664_s2 + $0x20] sm:$0xff]  ;;  %v607_v34 = vld [vmem:[%s2664_s2 + $0x10] sm:$0xff] }
  0x12   :  { %99 = vmatpush.xpose.msra.mxu0 %v90_v11  ;;  %v608_v33 = vld [vmem:[%s2664_s2 + $0x18] sm:$0xff]  ;;  %v81_v35 = vld [vmem:[%s2663_s1 + $0x10] sm:$0xff]  ;;  %v80_v36 = vld [vmem:[%s2663_s1 + $0x8] sm:$0xff] }
  0x13   :  { %1493 = vmatpush.xpose.msra.mxu1 %v90_v11  ;;  %1494 = vmatpush.xpose.msra.mxu2 %v90_v11  ;;  %v612_v37 = vld [vmem:[%s2664_s2 + $0x38] sm:$0xff]  ;;  %v611_v38 = vld [vmem:[%s2664_s2 + $0x30] sm:$0xff]  ;;  %v610_v39 = vld [vmem:[%s2664_s2 + $0x28] sm:$0xff] }
  0x14   :  { %1495 = vmatpush.xpose.msra.mxu3 %v90_v11  ;;  %219 = vperm.xlu2 %1539, %v168_v12   ;;  %v79_v40 = vld [vmem:[%s2663_s1] sm:$0xff]  ;;  %v615_v45 = vld [vmem:[%s2664_s2 + $0x50] sm:$0xff]  ;;  %v614_v46 = vld [vmem:[%s2664_s2 + $0x48] sm:$0xff] }
  0x15   :  { %214 = vperm.xlu1 %1538, %v167_v13   ;;  %209 = vperm.xlu0 %1537, %v166_v14   ;;  %v63_v41 = vld [vmem:[%s2662_s0] sm:$0xff]  ;;  %v64_v48 = vld [vmem:[%s2662_s0 + $0x8] sm:$0xff]  ;;  %v616_v54 = vld [vmem:[%s2664_s2 + $0x58] sm:$0xff] }
  0x16   :  { %100 = vmatpush.xpose.msra.mxu0 %v89_v15  ;;  %v67_v42 = vld [vmem:[%s2662_s0 + $0x20] sm:$0xff]  ;;  %v68_v49 = vld [vmem:[%s2662_s0 + $0x28] sm:$0xff]  ;;  %v65_v55 = vld [vmem:[%s2662_s0 + $0x10] sm:$0xff] }
  0x17   :  { %1496 = vmatpush.xpose.msra.mxu1 %v89_v15  ;;  %1497 = vmatpush.xpose.msra.mxu2 %v89_v15  ;;  %v71_v43 = vld [vmem:[%s2662_s0 + $0x40] sm:$0xff]  ;;  %v72_v50 = vld [vmem:[%s2662_s0 + $0x48] sm:$0xff]  ;;  %v69_v56 = vld [vmem:[%s2662_s0 + $0x30] sm:$0xff] }
  0x18   :  { %1498 = vmatpush.xpose.msra.mxu3 %v89_v15  ;;  %v75_v44 = vld [vmem:[%s2662_s0 + $0x60] sm:$0xff]  ;;  %v76_v51 = vld [vmem:[%s2662_s0 + $0x68] sm:$0xff]  ;;  %v73_v57 = vld [vmem:[%s2662_s0 + $0x50] sm:$0xff] }
  0x19   :  { %v613_v47 = vld [vmem:[%s2664_s2 + $0x40] sm:$0xff]  ;;  %v618_v52 = vld [vmem:[%s2664_s2 + $0x68] sm:$0xff]  ;;  %v77_v58 = vld [vmem:[%s2662_s0 + $0x70] sm:$0xff] }
  0x1a   :  { %101 = vmatpush.xpose.msra.mxu0 %v88_v16  ;;  %v617_v53 = vld [vmem:[%s2664_s2 + $0x60] sm:$0xff]  ;;  %v620_v59 = vld [vmem:[%s2664_s2 + $0x78] sm:$0xff]  ;;  %v619_v60 = vld [vmem:[%s2664_s2 + $0x70] sm:$0xff] }
  0x1b   :  { %1499 = vmatpush.xpose.msra.mxu1 %v88_v16  ;;  %1500 = vmatpush.xpose.msra.mxu2 %v88_v16  ;;  %v66_v61 = vld [vmem:[%s2662_s0 + $0x18] sm:$0xff] }
  0x1c   :  { %1501 = vmatpush.xpose.msra.mxu3 %v88_v16  ;;  %234 = vperm.xlu2 %1539, %v171_v17   ;;  %v70_v62 = vld [vmem:[%s2662_s0 + $0x38] sm:$0xff] }
  0x1d   :  { %229 = vperm.xlu1 %1538, %v170_v18   ;;  %224 = vperm.xlu0 %1537, %v169_v19   ;;  %v74_v63 = vld [vmem:[%s2662_s0 + $0x58] sm:$0xff]  ;;  %v325_v19 = vlaneseq }
  0x1e   :  { %102 = vmatpush.xpose.msra.mxu0 %v87_v20  ;;  %v78_v0 = vld [vmem:[%s2662_s0 + $0x78] sm:$0xff] }
  0x1f   :  { %1502 = vmatpush.xpose.msra.mxu1 %v87_v20  ;;  %1503 = vmatpush.xpose.msra.mxu2 %v87_v20 }
  0x20   :  { %1504 = vmatpush.xpose.msra.mxu3 %v87_v20  ;;  %v1857_v20 = vld [vmem:[%s2667_s5] ss:$0 sm:$0xff] }
  0x22   :  { %103 = vmatpush.xpose.msra.mxu0 %v86_v21 }
  0x23   :  { %1505 = vmatpush.xpose.msra.mxu1 %v86_v21  ;;  %1506 = vmatpush.xpose.msra.mxu2 %v86_v21 }
  0x24   :  { %1507 = vmatpush.xpose.msra.mxu3 %v86_v21  ;;  %249 = vperm.xlu2 %1539, %v174_v22   ;;  %v1859_v21 = vshrl.u32 %v325_v19, 7  ;;  %v1864_v22 = vld [vmem:[%s2665_s3] ss:$0 sm:$0xff] }
  0x25   :  { %244 = vperm.xlu1 %1538, %v173_v23   ;;  %239 = vperm.xlu0 %1537, %v172_v24  }
  0x26   :  { %104 = vmatpush.xpose.msra.mxu0 %v85_v25 }
  0x27   :  { %1508 = vmatpush.xpose.msra.mxu1 %v85_v25  ;;  %1509 = vmatpush.xpose.msra.mxu2 %v85_v25 }
  0x28   :  { %1510 = vmatpush.xpose.msra.mxu3 %v85_v25 }
  0x2a   :  { %105 = vmatpush.xpose.msra.mxu0 %v84_v26 }
  0x2b   :  { %1511 = vmatpush.xpose.msra.mxu1 %v84_v26  ;;  %1512 = vmatpush.xpose.msra.mxu2 %v84_v26 }
  0x2c   :  { %1513 = vmatpush.xpose.msra.mxu3 %v84_v26  ;;  %626 = vperm.xlu2 %1539, %v606_v27  }
  0x2d   :  { %623 = vperm.xlu1 %1538, %v605_v28   ;;  %254 = vperm.xlu0 %1537, %v175_v29   ;;  %v1871_v28 = vand.u32 127, %v325_v19 }
  0x2e   :  { %106 = vmatpush.xpose.msra.mxu0 %v83_v30 }
  0x2f   :  { %1514 = vmatpush.xpose.msra.mxu1 %v83_v30  ;;  %1515 = vmatpush.xpose.msra.mxu2 %v83_v30  ;;  %vm364_vm1 = vcmp.eq.s32.totalorder %v1859_v21, %v1871_v28  ;;  %vm604_vm3 = vcmp.lt.s32.totalorder %v1871_v28, 8 }
  0x30   :  { %1516 = vmatpush.xpose.msra.mxu3 %v83_v30  ;;  %v330_v30 = vadd.s32 32, %v1859_v21 }
  0x32   :  { %107 = vmatpush.xpose.msra.mxu0 %v82_v31  ;;  %vm368_vm2 = vcmp.eq.s32.totalorder %v330_v30, %v1871_v28 }
  0x33   :  { %1517 = vmatpush.xpose.msra.mxu1 %v82_v31  ;;  %1518 = vmatpush.xpose.msra.mxu2 %v82_v31 }
  0x34   :  { %1519 = vmatpush.xpose.msra.mxu3 %v82_v31  ;;  %635 = vperm.xlu2 %1539, %v609_v32  }
  0x35   :  { %632 = vperm.xlu1 %1538, %v608_v33   ;;  %629 = vperm.xlu0 %1537, %v607_v34  }
  0x36   :  { %108 = vmatpush.xpose.msra.mxu0 %v81_v35 }
  0x37   :  { %1520 = vmatpush.xpose.msra.mxu1 %v81_v35  ;;  %1521 = vmatpush.xpose.msra.mxu2 %v81_v35 }
  0x38   :  { %1522 = vmatpush.xpose.msra.mxu3 %v81_v35 }
  0x3a   :  { %109 = vmatpush.xpose.msra.mxu0 %v80_v36 }
  0x3b   :  { %1523 = vmatpush.xpose.msra.mxu1 %v80_v36  ;;  %1524 = vmatpush.xpose.msra.mxu2 %v80_v36 }
  0x3c   :  { %1525 = vmatpush.xpose.msra.mxu3 %v80_v36  ;;  %644 = vperm.xlu2 %1539, %v612_v37  }
  0x3d   :  { %641 = vperm.xlu1 %1538, %v611_v38   ;;  %638 = vperm.xlu0 %1537, %v610_v39  }
  0x3e   :  { %110 = vmatpush.xpose.msra.mxu0 %v79_v40 }
  0x3f   :  { %1526 = vmatpush.xpose.msra.mxu1 %v79_v40  ;;  %1527 = vmatpush.xpose.msra.mxu2 %v79_v40 }
  0x40   :  { %1528 = vmatpush.xpose.msra.mxu3 %v79_v40 }
  0x41   :  { %111 = vmatmul.f32.vlgmr.msra.gmra.mxu0 %v63_v41 }
  0x42   :  { %123 = vmatmul.f32.vlgmr.msra.gmra.mxu1 %v67_v42  ;;  %135 = vmatmul.f32.vlgmr.msra.gmra.mxu2 %v71_v43 }
  0x43   :  { %147 = vmatmul.f32.vlgmr.msra.gmra.mxu3 %v75_v44  ;;  %v334_v44 = vadd.s32 64, %v1859_v21 }
  0x44   :  { %653 = vperm.xlu2 %1539, %v615_v45   ;;  %v338_v45 = vadd.s32 96, %v1859_v21 }
  0x45   :  { %650 = vperm.xlu1 %1538, %v614_v46   ;;  %647 = vperm.xlu0 %1537, %v613_v47   ;;  %vm372_vm7 = vcmp.eq.s32.totalorder %v334_v44, %v1871_v28 }
  0x46   :  { %vm376_vm8 = vcmp.eq.s32.totalorder %v338_v45, %v1871_v28 }
  0x49   :  { %114 = vmatmul.f32.gmra.mxu0 %v64_v48 }
  0x4a   :  { %126 = vmatmul.f32.gmra.mxu1 %v68_v49  ;;  %138 = vmatmul.f32.gmra.mxu2 %v72_v50 }
  0x4b   :  { %150 = vmatmul.f32.gmra.mxu3 %v76_v51 }
  0x4c   :  { %662 = vperm.xlu2 %1539, %v618_v52  }
  0x4d   :  { %659 = vperm.xlu1 %1538, %v617_v53   ;;  %656 = vperm.xlu0 %1537, %v616_v54  }
  0x51   :  { %117 = vmatmul.f32.gmra.mxu0 %v65_v55 }
  0x52   :  { %129 = vmatmul.f32.gmra.mxu1 %v69_v56  ;;  %141 = vmatmul.f32.gmra.mxu2 %v73_v57 }
  0x53   :  { %153 = vmatmul.f32.gmra.mxu3 %v77_v58 }
  0x55   :  { %668 = vperm.xlu1 %1538, %v620_v59   ;;  %665 = vperm.xlu0 %1537, %v619_v60   ;;  %v327_v60 = vadd.s32 8, %v1859_v21 }
  0x57   :  { %vm365_vm11 = vcmp.eq.s32.totalorder %v327_v60, %v1871_v28 }
  0x59   :  { %120 = vmatmul.f32.gmra.mxu0 %v66_v61 }
  0x5a   :  { %132 = vmatmul.f32.gmra.mxu1 %v70_v62  ;;  %144 = vmatmul.f32.gmra.mxu2 %v74_v63 }
  0x5b   :  { %156 = vmatmul.f32.gmra.mxu3 %v78_v0  ;;  %v331_v0 = vadd.s32 40, %v1859_v21 }
  0x5d   :  { %vm369_vm12 = vcmp.eq.s32.totalorder %v331_v0, %v1871_v28 }
  0x5e   :  { %v200_v2 = vpop.permute.xlu2 %199 }
  0x5f   :  { %v264_v24 = vadd.f32 %v1857_v20, %v200_v2 }
  0x66   :  { %v205_v4 = vpop.permute.xlu2 %204 }
  0x67   :  { %v1869_v27 = vadd.f32 %v1857_v20, %v205_v4 }
  0x6e   :  { %v220_v7 = vpop.permute.xlu2 %219 }
  0x6f   :  { %v268_v31 = vadd.f32 %v1857_v20, %v220_v7 }
  0x76   :  { %v235_v10 = vpop.permute.xlu2 %234 }
  0x77   :  { %v180_v1 = vpop.permute.xlu0 %179  ;;  %v190_v6 = vpop.permute.xlu1 %189  ;;  %v1876_v32 = vadd.f32 %v1857_v20, %v235_v10 }
  0x78   :  { %v260_v25 = vadd.f32 %v1857_v20, %v180_v1  ;;  %v1883_v37 = vadd.f32 %v1857_v20, %v190_v6  ;;  %v1944_v1 = vadd.s32 72, %v1859_v21 }
  0x7a   :  { %vm373_vm14 = vcmp.eq.s32.totalorder %v1944_v1, %v1871_v28 }
  0x7e   :  { %v250_v13 = vpop.permute.xlu2 %249 }
  0x7f   :  { %v185_v3 = vpop.permute.xlu0 %184  ;;  %v195_v9 = vpop.permute.xlu1 %194  ;;  %v1886_v38 = vadd.f32 %v1857_v20, %v250_v13 }
  0x80   :  { %v1893_v39 = vadd.f32 %v1857_v20, %v195_v9  ;;  %v261_v40 = vadd.f32 %v1857_v20, %v185_v3 }
  0x86   :  { %v1848_v16 = vpop.permute.xlu2 %626 }
  0x87   :  { %v210_v5 = vpop.permute.xlu0 %209  ;;  %v215_v12 = vpop.permute.xlu1 %214 }
  0x88   :  { %v1903_v46 = vadd.f32 %v1857_v20, %v215_v12  ;;  %v1906_v47 = vadd.f32 %v1857_v20, %v210_v5 }
  0x8e   :  { %v1878_v33 = vpop.permute.xlu2 %635 }
  0x8f   :  { %v1844_v8 = vpop.permute.xlu0 %224  ;;  %v230_v15 = vpop.permute.xlu1 %229  ;;  %vm675_vm0 = vcmp.eq.s32.totalorder %v1878_v33, %v1864_v22 }
  0x90   :  { %vm1912_vm5 = vmxor %vm675_vm0, %vm1605_vm4  ;;  %v1919_v52 = vadd.f32 %v1857_v20, %v230_v15  ;;  %v1950_v6 = vadd.f32 %v1857_v20, %v1844_v8 }
  0x91   :  { %vm739_vm9 = vmand %vm1912_vm5, %vm604_vm3 }
  0x92   :  { %vm691_vm5 = vmand %vm675_vm0, %vm604_vm3 }
  0x97   :  { %v240_v11 = vpop.permute.xlu0 %239  ;;  %v1852_v18 = vpop.permute.xlu1 %244 }
  0x98   :  { %v272_v53 = vadd.f32 %v1857_v20, %v240_v11  ;;  %v1954_v7 = vadd.f32 %v1857_v20, %v1852_v18 }
  0x9f   :  { %v1846_v14 = vpop.permute.xlu0 %254  ;;  %v1896_v41 = vpop.permute.xlu1 %623 }
  0xa0   :  { %vm671_vm6 = vcmp.eq.s32.totalorder %v1896_v41, %v1864_v22  ;;  %v1960_v13 = vadd.f32 %v1857_v20, %v1846_v14  ;;  %v1980_v14 = vadd.s32 104, %v1859_v21 }
  0xa1   :  { %vm687_vm10 = vmand %vm671_vm6, %vm604_vm3 }
  0xa2   :  { %vm1991_vm15 = vmxor %vm671_vm6, %vm1605_vm4 }
  0xa3   :  { %vm2028_vm0 = vmand %vm1991_vm15, %vm604_vm3 }
  0xa7   :  { %v1850_v17 = vpop.permute.xlu0 %629 }
  0xaf   :  { %v1880_v34 = vpop.permute.xlu0 %638 }
  0xb7   :  { %v1956_v9 = vpop.permute.xlu0 %647 }
  0xb8   :  { %vm679_vm13 = vcmp.eq.s32.totalorder %v1956_v9, %v1864_v22 }
  0xbe   :  { %v112_v23 = vpop.f32.mrf.mxu0 }
  0xbf   :  { %v276_v26 = vmul.f32 2.0, %v112_v23  ;;  %v124_v29 = vpop.f32.mrf.mxu1 }
  0xc0   :  { %v280_v36 = vmul.f32 2.0, %v124_v29 }
  0xc1   :  { %v292_v35 = vsub.f32 %v260_v25, %v276_v26 }
  0xc2   :  { %v296_v43 = vsub.f32 %v264_v24, %v280_v36 }
  0xc3   :  { %v308_v42 = vmax.f32 %v292_v35, 0.0  ;;  %v2001_v35 = vadd.s32 48, %v1859_v21 }
  0xc4   :  { %v312_v50 = vmax.f32 %v296_v43, 0.0  ;;  %v2011_v43 = vpop.permute.xlu1 %632 }
  0xc5   :  { %v1916_v49 = vsel %vm364_vm1, 0.0, %v308_v42  ;;  %v136_v51 = vpop.f32.mrf.mxu2 }
  0xc6   :  { %1542 = vrsqrt.f32 %v1916_v49  ;;  %v148_v54 = vpop.f32.mrf.mxu3  ;;  %v115_v55 = vpop.f32.mrf.mxu0  ;;  %v1927_v56 = vsel %vm368_vm2, 0.0, %v312_v50  ;;  %v284_v57 = vmul.f32 2.0, %v136_v51  ;;  %v703_v5 = vsel %vm687_vm10, %v1916_v49, -inf }
  0xc7   :  { %v288_v58 = vmul.f32 2.0, %v148_v54  ;;  %v277_v59 = vmul.f32 2.0, %v115_v55  ;;  %1544 = vrsqrt.f32 %v1927_v56  ;;  %v127_v61 = vpop.f32.mrf.mxu1  ;;  %v755_v4 = vsel %vm739_vm9, %v1927_v56, inf  ;;  %783 = vmax.xlane.f32.xlu2 %v703_v5  ;;  %vm695_vm9 = vmand %vm679_vm13, %vm604_vm3 }
  0xc8   :  { %v300_v62 = vsub.f32 %v268_v31, %v284_v57  ;;  %v281_v3 = vmul.f32 2.0, %v127_v61  ;;  %872 = vmin.xlane.f32.xlu0 %v755_v4  ;;  %vm403_vm1 = vcmp.eq.f32.partialorder %v1916_v49, inf  ;;  %vm405_vm2 = vcmp.eq.f32.partialorder %v1916_v49, 0.0 }
  0xc9   :  { %v304_v63 = vsub.f32 %v272_v53, %v288_v58  ;;  %v293_v2 = vsub.f32 %v261_v40, %v277_v59  ;;  %v406_v40 = vand.u32 2147483648, %v1916_v49  ;;  %vm451_vm6 = vcmp.eq.f32.partialorder %v1927_v56, inf }
  0xca   :  { %v316_v10 = vmax.f32 %v300_v62, 0.0  ;;  %v297_v8 = vsub.f32 %v1869_v27, %v281_v3  ;;  %v1985_v27 = vadd.s32 16, %v1859_v21  ;;  %v707_v48 = vsel %vm691_vm5, %v1927_v56, -inf }
  0xcb   :  { %v320_v11 = vmax.f32 %v304_v63, 0.0  ;;  %v309_v15 = vmax.f32 %v293_v2, 0.0  ;;  %v454_v33 = vand.u32 2147483648, %v1927_v56  ;;  %v2039_v59 = vadd.s32 80, %v1859_v21 }
  0xcc   :  { %v1543_v12 = vpop.eup %1542  ;;  %v1967_v18 = vsel %vm372_vm7, 0.0, %v316_v10  ;;  %v313_v31 = vmax.f32 %v297_v8, 0.0  ;;  %vm377_vm7 = vcmp.eq.s32.totalorder %v1980_v14, %v1871_v28  ;;  %v751_v60 = vsel %vm2028_vm0, %v1916_v49, inf }
  0xcd   :  { %v397_v19 = vmul.f32 %v1543_v12, %v1916_v49  ;;  %v1971_v23 = vsel %vm376_vm8, 0.0, %v320_v11  ;;  %v1545_v24 = vpop.eup %1544  ;;  %1546 = vrsqrt.f32 %v1967_v18  ;;  %v139_v26 = vpop.f32.mrf.mxu2  ;;  %v1998_v30 = vsel %vm365_vm11, 0.0, %v309_v15 }
  0xce   :  { %v445_v25 = vmul.f32 %v1545_v24, %v1927_v56  ;;  %1548 = vrsqrt.f32 %v1971_v23  ;;  %v151_v42 = vpop.f32.mrf.mxu3  ;;  %v2016_v44 = vsel %vm369_vm12, 0.0, %v313_v31  ;;  %v285_v45 = vmul.f32 2.0, %v139_v26  ;;  %v118_v58 = vpop.f32.mrf.mxu0 }
  0xcf   :  { %v398_v20 = vmul.f32 %v1543_v12, %v397_v19  ;;  %1550 = vrsqrt.f32 %v1998_v30  ;;  %vm453_vm8 = vcmp.eq.f32.partialorder %v1927_v56, 0.0  ;;  %791 = vmax.xlane.f32.xlu2 %v707_v48  ;;  %v289_v57 = vmul.f32 2.0, %v151_v42 }
  0xd0   :  { %v446_v41 = vmul.f32 %v1545_v24, %v445_v25  ;;  %1552 = vrsqrt.f32 %v2016_v44  ;;  %v301_v55 = vsub.f32 %v1950_v6, %v285_v45  ;;  %vm672_vm10 = vcmp.eq.s32.totalorder %v1848_v16, %v1864_v22  ;;  %v130_v45 = vpop.f32.mrf.mxu1 }
  0xd1   :  { %v399_v36 = vmul.f32 0.5, %v398_v20  ;;  %v711_v2 = vsel %vm695_vm9, %v1967_v18, -inf  ;;  %v502_v3 = vand.u32 2147483648, %v1967_v18  ;;  %v305_v6 = vsub.f32 %v1954_v7, %v289_v57  ;;  %vm2140_vm9 = vmxor %vm679_vm13, %vm1605_vm4 }
  0xd2   :  { %v447_v51 = vmul.f32 0.5, %v446_v41  ;;  %v317_v5 = vmax.f32 %v301_v55, 0.0  ;;  %799 = vmax.xlane.f32.xlu1 %v711_v2  ;;  %v278_v19 = vmul.f32 2.0, %v118_v58  ;;  %vm499_vm11 = vcmp.eq.f32.partialorder %v1967_v18, inf }
  0xd3   :  { %v400_v50 = vsub.f32 1.5, %v399_v36  ;;  %v1547_v54 = vpop.eup %1546  ;;  %v321_v26 = vmax.f32 %v305_v6, 0.0  ;;  %vm366_vm12 = vcmp.eq.s32.totalorder %v1985_v27, %v1871_v28  ;;  %vm501_vm15 = vcmp.eq.f32.partialorder %v1967_v18, 0.0 }
  0xd4   :  { %v1549_v61 = vpop.eup %1548  ;;  %v448_v63 = vsub.f32 1.5, %v447_v51  ;;  %v493_v0 = vmul.f32 %v1547_v54, %v1967_v18  ;;  %v2057_v25 = vsel %vm373_vm14, 0.0, %v317_v5  ;;  %vm547_vm5 = vcmp.eq.f32.partialorder %v1971_v23, inf }
  0xd5   :  { %v401_v62 = vmul.f32 %v1543_v12, %v400_v50  ;;  %v541_v4 = vmul.f32 %v1549_v61, %v1971_v23  ;;  %v1551_v10 = vpop.eup %1550  ;;  %1554 = vrsqrt.f32 %v2057_v25  ;;  %vm549_vm14 = vcmp.eq.f32.partialorder %v1971_v23, 0.0 }
  0xd6   :  { %v449_v15 = vmul.f32 %v1545_v24, %v448_v63  ;;  %v494_v8 = vmul.f32 %v1547_v54, %v493_v0  ;;  %v409_v20 = vmul.f32 %v1551_v10, %v1998_v30  ;;  %v1553_v7 = vpop.eup %1552  ;;  %v550_v51 = vand.u32 2147483648, %v1971_v23  ;;  %v121_v9 = vpop.f32.mrf.mxu0 }
  0xd7   :  { %v402_v11 = vmul.f32 %v401_v62, %v1916_v49  ;;  %v542_v12 = vmul.f32 %v1549_v61, %v541_v4  ;;  %v457_v42 = vmul.f32 %v1553_v7, %v2016_v44  ;;  %864 = vmin.xlane.f32.xlu2 %v751_v60  ;;  %v2085_v62 = vsel %vm377_vm7, 0.0, %v321_v26  ;;  %vm688_vm7 = vmand %vm672_vm10, %vm604_vm3 }
  0xd8   :  { %v450_v29 = vmul.f32 %v449_v15, %v1927_v56  ;;  %v495_v31 = vmul.f32 0.5, %v494_v8  ;;  %v410_v41 = vmul.f32 %v1551_v10, %v409_v20  ;;  %v294_v63 = vsub.f32 %v1883_v37, %v278_v19  ;;  %v2105_v19 = vpop.permute.xlu2 %644 }
  0xd9   :  { %v404_v24 = vsel %vm403_vm1, %v1916_v49, %v402_v11  ;;  %v543_v36 = vmul.f32 0.5, %v542_v12  ;;  %vm370_vm1 = vcmp.eq.s32.totalorder %v2001_v35, %v1871_v28  ;;  %v2078_v49 = vpop.permute.xlu1 %641  ;;  %v458_v57 = vmul.f32 %v1553_v7, %v457_v42 }
  0xda   :  { %v407_v1 = vsel %vm405_vm2, %v406_v40, %v404_v24  ;;  %v452_v48 = vsel %vm451_vm6, %v1927_v56, %v450_v29  ;;  %v496_v50 = vsub.f32 1.5, %v495_v31  ;;  %v411_v55 = vmul.f32 0.5, %v410_v41 }
  0xdb   :  { %588 = vst [vmem:[#allocation4] sm:$0xff] %v407_v1  ;;  %v455_v40 = vsel %vm453_vm8, %v454_v33, %v452_v48  ;;  %v544_v53 = vsub.f32 1.5, %v543_v36  ;;  %v282_v0 = vmul.f32 2.0, %v130_v45  ;;  %v459_v4 = vmul.f32 0.5, %v458_v57  ;;  %v1555_v56 = vpop.eup %1554 }
  0xdc   :  { %592 = vst [vmem:[#allocation4 + $0x20] sm:$0xff] %v455_v40  ;;  %v497_v58 = vmul.f32 %v1547_v54, %v496_v50  ;;  %v412_v60 = vsub.f32 1.5, %v411_v55  ;;  %1556 = vrsqrt.f32 %v2085_v62  ;;  %vm415_vm2 = vcmp.eq.f32.partialorder %v1998_v30, inf  ;;  %v154_v55 = vpop.f32.mrf.mxu3 }
  0xdd   :  { %v545_v2 = vmul.f32 %v1549_v61, %v544_v53  ;;  %vm417_vm6 = vcmp.eq.f32.partialorder %v1998_v30, 0.0  ;;  %v418_v54 = vand.u32 2147483648, %v1998_v30  ;;  %v460_v6 = vsub.f32 1.5, %v459_v4 }
  0xde   :  { %v498_v33 = vmul.f32 %v497_v58, %v1967_v18  ;;  %v413_v5 = vmul.f32 %v1551_v10, %v412_v60  ;;  %v505_v37 = vmul.f32 %v1555_v56, %v2057_v25  ;;  %v310_v11 = vmax.f32 %v294_v63, 0.0 }
  0xdf   :  { %v546_v14 = vmul.f32 %v545_v2, %v1971_v23  ;;  %v298_v15 = vsub.f32 %v1906_v47, %v282_v0  ;;  %v704_v8 = vsel %vm688_vm7, %v1998_v30, -inf  ;;  %v461_v26 = vmul.f32 %v1553_v7, %v460_v6 }
  0xe0   :  { %v500_v61 = vsel %vm499_vm11, %v1967_v18, %v498_v33  ;;  %v414_v20 = vmul.f32 %v413_v5, %v1998_v30  ;;  %785 = vmax.xlane.f32.xlu0 %v704_v8  ;;  %v506_v24 = vmul.f32 %v1555_v56, %v505_v37  ;;  %v2120_v29 = vsel %vm366_vm12, 0.0, %v310_v11  ;;  %v2167_v11 = vpop.permute.xlu2 %653 }
  0xe1   :  { %v503_v10 = vsel %vm501_vm15, %v502_v3, %v500_v61  ;;  %v548_v12 = vsel %vm547_vm5, %v1971_v23, %v546_v14  ;;  %v314_v31 = vmax.f32 %v298_v15, 0.0  ;;  %v142_v3 = vpop.f32.mrf.mxu2  ;;  %v462_v7 = vmul.f32 %v461_v26, %v2016_v44  ;;  %v2134_v48 = vpop.permute.xlu1 %650  ;;  %vm743_vm5 = vmand %vm2140_vm9, %vm604_vm3 }
  0xe2   :  { %596 = vst [vmem:[#allocation4 + $0x40] sm:$0xff] %v503_v10  ;;  %v551_v47 = vsel %vm549_vm14, %v550_v51, %v548_v12  ;;  %v1557_v1 = vpop.eup %1556  ;;  %v416_v36 = vsel %vm415_vm2, %v1998_v30, %v414_v20  ;;  %vm463_vm8 = vcmp.eq.f32.partialorder %v2016_v44, inf  ;;  %1558 = vrsqrt.f32 %v2120_v29  ;;  %v133_v26 = vpop.f32.mrf.mxu1 }
  0xe3   :  { %600 = vst [vmem:[#allocation4 + $0x60] sm:$0xff] %v551_v47  ;;  %vm676_vm0 = vcmp.eq.s32.totalorder %v1880_v34, %v1864_v22  ;;  %v419_v27 = vsel %vm417_vm6, %v418_v54, %v416_v36  ;;  %v466_v41 = vand.u32 2147483648, %v2016_v44  ;;  %v507_v42 = vmul.f32 0.5, %v506_v24 }
  0xe4   :  { %v553_v45 = vmul.f32 %v1557_v1, %v2085_v62  ;;  %589 = vst [vmem:[#allocation4 + $0x8] sm:$0xff] %v419_v27  ;;  %v464_v51 = vsel %vm463_vm8, %v2016_v44, %v462_v7  ;;  %vm465_vm11 = vcmp.eq.f32.partialorder %v2016_v44, 0.0  ;;  %v2149_v40 = vsel %vm370_vm1, 0.0, %v314_v31  ;;  %vm692_vm7 = vmand %vm676_vm0, %vm604_vm3 }
  0xe5   :  { %v286_v53 = vmul.f32 2.0, %v142_v3  ;;  %v467_v57 = vsel %vm465_vm11, %v466_v41, %v464_v51  ;;  %v508_v58 = vsub.f32 1.5, %v507_v42  ;;  %1560 = vrsqrt.f32 %v2149_v40 }
  0xe6   :  { %v554_v63 = vmul.f32 %v1557_v1, %v553_v45  ;;  %593 = vst [vmem:[#allocation4 + $0x28] sm:$0xff] %v467_v57  ;;  %vm511_vm13 = vcmp.eq.f32.partialorder %v2057_v25, inf  ;;  %vm513_vm12 = vcmp.eq.f32.partialorder %v2057_v25, 0.0  ;;  %vm374_vm15 = vcmp.eq.s32.totalorder %v2039_v59, %v1871_v28 }
  0xe7   :  { %v302_v0 = vsub.f32 %v1919_v52, %v286_v53  ;;  %v509_v35 = vmul.f32 %v1555_v56, %v508_v58  ;;  %v514_v2 = vand.u32 2147483648, %v2057_v25  ;;  %v290_v4 = vmul.f32 2.0, %v154_v55 }
  0xe8   :  { %v555_v60 = vmul.f32 0.5, %v554_v63  ;;  %v1559_v33 = vpop.eup %1558  ;;  %v340_v14 = vadd.s32 112, %v1859_v21  ;;  %v759_v5 = vsel %vm743_vm5, %v1967_v18, inf  ;;  %v279_v52 = vmul.f32 2.0, %v121_v9 }
  0xe9   :  { %v318_v54 = vmax.f32 %v302_v0, 0.0  ;;  %v510_v6 = vmul.f32 %v509_v35, %v2057_v25  ;;  %v421_v56 = vmul.f32 %v1559_v33, %v2120_v29  ;;  %v306_v61 = vsub.f32 %v1886_v38, %v290_v4  ;;  %880 = vmin.xlane.f32.xlu1 %v759_v5  ;;  %v145_v9 = vpop.f32.mrf.mxu2 }
  0xea   :  { %v556_v37 = vsub.f32 1.5, %v555_v60  ;;  %vm559_vm14 = vcmp.eq.f32.partialorder %v2085_v62, inf  ;;  %v295_v18 = vsub.f32 %v1893_v39, %v279_v52  ;;  %v329_v8 = vadd.s32 24, %v1859_v21 }
  0xeb   :  { %v2173_v15 = vsel %vm374_vm15, 0.0, %v318_v54  ;;  %v1561_v10 = vpop.eup %1560  ;;  %v512_v12 = vsel %vm511_vm13, %v2057_v25, %v510_v6  ;;  %v422_v20 = vmul.f32 %v1559_v33, %v421_v56  ;;  %vm561_vm1 = vcmp.eq.f32.partialorder %v2085_v62, 0.0  ;;  %v2220_v54 = vpop.permute.xlu2 %662  ;;  %vm2231_vm15 = vmxor %vm672_vm10, %vm1605_vm4 }
  0xec   :  { %v557_v38 = vmul.f32 %v1557_v1, %v556_v37  ;;  %1562 = vrsqrt.f32 %v2173_v15  ;;  %v515_v47 = vsel %vm513_vm12, %v514_v2, %v512_v12  ;;  %v469_v59 = vmul.f32 %v1561_v10, %v2149_v40  ;;  %v2188_v1 = vpop.permute.xlu1 %659  ;;  %v157_v2 = vpop.f32.mrf.mxu3 }
  0xed   :  { %vm378_vm2 = vcmp.eq.s32.totalorder %v340_v14, %v1871_v28  ;;  %597 = vst [vmem:[#allocation4 + $0x48] sm:$0xff] %v515_v47  ;;  %v562_v24 = vand.u32 2147483648, %v2085_v62  ;;  %v423_v31 = vmul.f32 0.5, %v422_v20  ;;  %v322_v3 = vmax.f32 %v306_v61, 0.0 }
  0xee   :  { %v558_v39 = vmul.f32 %v557_v38, %v2085_v62  ;;  %v470_v36 = vmul.f32 %v1561_v10, %v469_v59  ;;  %v311_v7 = vmax.f32 %v295_v18, 0.0  ;;  %vm367_vm6 = vcmp.eq.s32.totalorder %v329_v8, %v1871_v28 }
  0xef   :  { %v283_v27 = vmul.f32 2.0, %v133_v26  ;;  %v424_v42 = vsub.f32 1.5, %v423_v31  ;;  %v2199_v45 = vsel %vm378_vm2, 0.0, %v322_v3  ;;  %v708_v50 = vsel %vm692_vm7, %v2016_v44, -inf }
  0xf0   :  { %v560_v41 = vsel %vm559_vm14, %v2085_v62, %v558_v39  ;;  %v471_v53 = vmul.f32 0.5, %v470_v36  ;;  %1564 = vrsqrt.f32 %v2199_v45  ;;  %v333_v55 = vadd.s32 56, %v1859_v21  ;;  %793 = vmax.xlane.f32.xlu0 %v708_v50  ;;  %vm2245_vm14 = vmxor %vm676_vm0, %vm1605_vm4 }
  0xf1   :  { %v563_v51 = vsel %vm561_vm1, %v562_v24, %v560_v41  ;;  %vm683_vm8 = vcmp.eq.s32.totalorder %v2188_v1, %v1864_v22  ;;  %v425_v58 = vmul.f32 %v1559_v33, %v424_v42  ;;  %vm427_vm9 = vcmp.eq.f32.partialorder %v2120_v29, inf  ;;  %vm2267_vm1 = vmand %vm2231_vm15, %vm604_vm3 }
  0xf2   :  { %v1563_v57 = vpop.eup %1562  ;;  %601 = vst [vmem:[#allocation4 + $0x68] sm:$0xff] %v563_v51  ;;  %v2211_v63 = vsel %vm367_vm6, 0.0, %v311_v7  ;;  %vm429_vm11 = vcmp.eq.f32.partialorder %v2120_v29, 0.0  ;;  %v472_v0 = vsub.f32 1.5, %v471_v53  ;;  %v430_v4 = vand.u32 2147483648, %v2120_v29  ;;  %vm740_vm6 = vmand %vm2245_vm14, %vm604_vm3 }
  0xf3   :  { %v517_v35 = vmul.f32 %v1563_v57, %v2173_v15  ;;  %1566 = vrsqrt.f32 %v2211_v63  ;;  %v426_v60 = vmul.f32 %v425_v58, %v2120_v29  ;;  %vm475_vm13 = vcmp.eq.f32.partialorder %v2149_v40, inf  ;;  %vm699_vm7 = vmand %vm683_vm8, %vm604_vm3 }
  0xf4   :  { %v299_v33 = vsub.f32 %v1903_v46, %v283_v27  ;;  %v473_v14 = vmul.f32 %v1561_v10, %v472_v0  ;;  %vm371_vm12 = vcmp.eq.s32.totalorder %v333_v55, %v1871_v28  ;;  %v287_v52 = vmul.f32 2.0, %v145_v9  ;;  %vm2306_vm15 = vmxor %vm683_vm8, %vm1605_vm4 }
  0xf5   :  { %v518_v5 = vmul.f32 %v1563_v57, %v517_v35  ;;  %v428_v6 = vsel %vm427_vm9, %v2120_v29, %v426_v60  ;;  %v337_v56 = vadd.s32 88, %v1859_v21  ;;  %v291_v61 = vmul.f32 2.0, %v157_v2 }
  0xf6   :  { %v315_v37 = vmax.f32 %v299_v33, 0.0  ;;  %v1565_v18 = vpop.eup %1564  ;;  %v431_v8 = vsel %vm429_vm11, %v430_v4, %v428_v6  ;;  %v474_v10 = vmul.f32 %v473_v14, %v2149_v40  ;;  %v303_v38 = vsub.f32 %v1876_v32, %v287_v52 }
  0xf7   :  { %v519_v12 = vmul.f32 0.5, %v518_v5  ;;  %vm684_vm5 = vcmp.eq.s32.totalorder %v2220_v54, %v1864_v22  ;;  %590 = vst [vmem:[#allocation4 + $0x10] sm:$0xff] %v431_v8  ;;  %v478_v20 = vand.u32 2147483648, %v2149_v40  ;;  %v565_v26 = vmul.f32 %v1565_v18, %v2199_v45 }
  0xf8   :  { %v2253_v47 = vsel %vm371_vm12, 0.0, %v315_v37  ;;  %v307_v32 = vsub.f32 %v1960_v13, %v291_v61  ;;  %v476_v34 = vsel %vm475_vm13, %v2149_v40, %v474_v10  ;;  %vm477_vm10 = vcmp.eq.f32.partialorder %v2149_v40, 0.0 }
  0xf9   :  { %v1567_v59 = vpop.eup %1566  ;;  %v520_v39 = vsub.f32 1.5, %v519_v12  ;;  %1568 = vrsqrt.f32 %v2253_v47  ;;  %v479_v24 = vsel %vm477_vm10, %v478_v20, %v476_v34  ;;  %v566_v31 = vmul.f32 %v1565_v18, %v565_v26 }
  0xfa   :  { %v433_v3 = vmul.f32 %v1567_v59, %v2211_v63  ;;  %vm375_vm0 = vcmp.eq.s32.totalorder %v337_v56, %v1871_v28  ;;  %594 = vst [vmem:[#allocation4 + $0x30] sm:$0xff] %v479_v24  ;;  %vm523_vm2 = vcmp.eq.f32.partialorder %v2173_v15, inf  ;;  %v319_v7 = vmax.f32 %v303_v38, 0.0 }
  0xfb   :  { %v521_v36 = vmul.f32 %v1563_v57, %v520_v39  ;;  %v323_v27 = vmax.f32 %v307_v32, 0.0  ;;  %v567_v41 = vmul.f32 0.5, %v566_v31  ;;  %v341_v50 = vadd.s32 120, %v1859_v21 }
  0xfc   :  { %v434_v42 = vmul.f32 %v1567_v59, %v433_v3  ;;  %v756_v51 = vsel %vm740_vm6, %v2016_v44, inf  ;;  %v2284_v55 = vsel %vm375_vm0, 0.0, %v319_v7  ;;  %v715_v57 = vsel %vm699_vm7, %v1971_v23, -inf }
  0xfd   :  { %v522_v53 = vmul.f32 %v521_v36, %v2173_v15  ;;  %874 = vmin.xlane.f32.xlu1 %v756_v51  ;;  %v752_v58 = vsel %vm2267_vm1, %v1998_v30, inf  ;;  %v526_v21 = vand.u32 2147483648, %v2173_v15  ;;  %v568_v44 = vsub.f32 1.5, %v567_v41  ;;  %807 = vmax.xlane.f32.xlu2 %v715_v57  ;;  %vm2329_vm1 = vmand %vm684_vm5, %vm604_vm3 }
  0xfe   :  { %v435_v9 = vmul.f32 0.5, %v434_v42  ;;  %1570 = vrsqrt.f32 %v2284_v55  ;;  %866 = vmin.xlane.f32.xlu0 %v752_v58  ;;  %vm673_vm9 = vcmp.eq.s32.totalorder %v1850_v17, %v1864_v22  ;;  %vm525_vm11 = vcmp.eq.f32.partialorder %v2173_v15, 0.0  ;;  %v2397_v42 = vpop.permute.xlu0 %656 }
  0xff   :  { %v1569_v0 = vpop.eup %1568  ;;  %v524_v35 = vsel %vm523_vm2, %v2173_v15, %v522_v53  ;;  %vm379_vm13 = vcmp.eq.s32.totalorder %v341_v50, %v1871_v28  ;;  %v569_v2 = vmul.f32 %v1565_v18, %v568_v44  ;;  %vm674_vm12 = vcmp.eq.s32.totalorder %v2011_v43, %v1864_v22  ;;  %vm689_vm8 = vmand %vm673_vm9, %vm604_vm3 }
 0x100   :  { %v527_v30 = vsel %vm525_vm11, %v526_v21, %v524_v35  ;;  %v436_v60 = vsub.f32 1.5, %v435_v9  ;;  %v481_v4 = vmul.f32 %v1569_v0, %v2253_v47  ;;  %vm571_vm14 = vcmp.eq.f32.partialorder %v2199_v45, inf  ;;  %vm747_vm2 = vmand %vm2306_vm15, %vm604_vm3 }
 0x101   :  { %598 = vst [vmem:[#allocation4 + $0x50] sm:$0xff] %v527_v30  ;;  %v2311_v14 = vsel %vm379_vm13, 0.0, %v323_v27  ;;  %v570_v5 = vmul.f32 %v569_v2, %v2199_v45  ;;  %vm573_vm10 = vcmp.eq.f32.partialorder %v2199_v45, 0.0  ;;  %v574_v1 = vand.u32 2147483648, %v2199_v45  ;;  %vm2349_vm6 = vmxor %vm674_vm12, %vm1605_vm4 }
 0x102   :  { %v437_v52 = vmul.f32 %v1567_v59, %v436_v60  ;;  %v482_v6 = vmul.f32 %v1569_v0, %v481_v4  ;;  %1572 = vrsqrt.f32 %v2311_v14  ;;  %vm439_vm0 = vcmp.eq.f32.partialorder %v2211_v63, inf  ;;  %vm2366_vm15 = vmand %vm674_vm12, %vm604_vm3 }
 0x103   :  { %v442_v37 = vand.u32 2147483648, %v2211_v63  ;;  %v572_v18 = vsel %vm571_vm14, %v2199_v45, %v570_v5  ;;  %v705_v10 = vsel %vm689_vm8, %v2120_v29, -inf  ;;  %v763_v16 = vsel %vm747_vm2, %v1971_v23, inf  ;;  %vm2380_vm8 = vmand %vm2349_vm6, %vm604_vm3 }
 0x104   :  { %v1571_v61 = vpop.eup %1570  ;;  %v438_v46 = vmul.f32 %v437_v52, %v2211_v63  ;;  %v483_v8 = vmul.f32 0.5, %v482_v6  ;;  %v575_v12 = vsel %vm573_vm10, %v574_v1, %v572_v18  ;;  %v716_v20 = vsel %vm2329_vm1, %v2085_v62, -inf  ;;  %v669_v18 = vpop.permute.xlu1 %668 }
 0x105   :  { %v529_v38 = vmul.f32 %v1571_v61, %v2284_v55  ;;  %787 = vmax.xlane.f32.xlu1 %v705_v10  ;;  %602 = vst [vmem:[#allocation4 + $0x70] sm:$0xff] %v575_v12  ;;  %vm441_vm7 = vcmp.eq.f32.partialorder %v2211_v63, 0.0  ;;  %888 = vmin.xlane.f32.xlu2 %v763_v16  ;;  %vm677_vm11 = vcmp.eq.s32.totalorder %v2078_v49, %v1864_v22  ;;  %v706_v36 = vsel %vm2366_vm15, %v2211_v63, -inf }
 0x106   :  { %v440_v32 = vsel %vm439_vm0, %v2211_v63, %v438_v46  ;;  %v484_v23 = vsub.f32 1.5, %v483_v8  ;;  %809 = vmax.xlane.f32.xlu0 %v716_v20  ;;  %vm680_vm13 = vcmp.eq.s32.totalorder %v2134_v48, %v1864_v22  ;;  %vm681_vm14 = vcmp.eq.s32.totalorder %v2167_v11, %v1864_v22  ;;  %vm2390_vm12 = vmand %vm677_vm11, %vm604_vm3  ;;  %v666_v6 = vpop.permute.xlu0 %665 }
 0x107   :  { %v443_v59 = vsel %vm441_vm7, %v442_v37, %v440_v32  ;;  %v530_v34 = vmul.f32 %v1571_v61, %v529_v38  ;;  %v754_v41 = vsel %vm2380_vm8, %v2211_v63, inf  ;;  %vm487_vm10 = vcmp.eq.f32.partialorder %v2253_v47, inf  ;;  %vm696_vm0 = vmand %vm680_vm13, %vm604_vm3 }
 0x108   :  { %v1573_v39 = vpop.eup %1572  ;;  %591 = vst [vmem:[#allocation4 + $0x18] sm:$0xff] %v443_v59  ;;  %v485_v24 = vmul.f32 %v1569_v0, %v484_v23  ;;  %v490_v50 = vand.u32 2147483648, %v2253_v47  ;;  %vm489_vm1 = vcmp.eq.f32.partialorder %v2253_v47, 0.0  ;;  %v709_v58 = vsel %vm2390_vm12, %v2149_v40, -inf  ;;  %vm697_vm2 = vmand %vm681_vm14, %vm604_vm3 }
 0x109   :  { %v531_v3 = vmul.f32 0.5, %v530_v34  ;;  %v577_v13 = vmul.f32 %v1573_v39, %v2311_v14  ;;  %v712_v21 = vsel %vm696_vm0, %v2057_v25, -inf  ;;  %v713_v35 = vsel %vm697_vm2, %v2173_v15, -inf  ;;  %vm729_vm6 = vmxor %vm681_vm14, %vm1605_vm4 }
 0x10a   :  { %v486_v7 = vmul.f32 %v485_v24, %v2253_v47  ;;  %vm721_vm7 = vmxor %vm673_vm9, %vm1605_vm4  ;;  %vm535_vm12 = vcmp.eq.f32.partialorder %v2284_v55, inf  ;;  %v538_v60 = vand.u32 2147483648, %v2284_v55  ;;  %vm537_vm14 = vcmp.eq.f32.partialorder %v2284_v55, 0.0 }
 0x10b   :  { %v532_v51 = vsub.f32 1.5, %v531_v3  ;;  %v578_v53 = vmul.f32 %v1573_v39, %v577_v13  ;;  %vm2437_vm0 = vmand %vm729_vm6, %vm604_vm3  ;;  %v586_v48 = vand.u32 2147483648, %v2311_v14  ;;  %vm585_vm2 = vcmp.eq.f32.partialorder %v2311_v14, 0.0 }
 0x10c   :  { %v488_v57 = vsel %vm487_vm10, %v2253_v47, %v486_v7  ;;  %vm728_vm10 = vmxor %vm680_vm13, %vm1605_vm4  ;;  %vm583_vm13 = vcmp.eq.f32.partialorder %v2311_v14, inf  ;;  %v761_v56 = vsel %vm2437_vm0, %v2173_v15, inf  ;;  %vm678_vm6 = vcmp.eq.s32.totalorder %v2105_v19, %v1864_v22 }
 0x10d   :  { %v491_v44 = vsel %vm489_vm1, %v490_v50, %v488_v57  ;;  %v533_v9 = vmul.f32 %v1571_v61, %v532_v51  ;;  %v579_v0 = vmul.f32 0.5, %v578_v53  ;;  %795 = vmax.xlane.f32.xlu1 %v709_v58  ;;  %801 = vmax.xlane.f32.xlu2 %v712_v21  ;;  %vm737_vm9 = vmand %vm721_vm7, %vm604_vm3  ;;  %vm685_vm7 = vcmp.eq.s32.totalorder %v666_v6, %v1864_v22 }
 0x10e   :  { %595 = vst [vmem:[#allocation4 + $0x38] sm:$0xff] %v491_v44  ;;  %803 = vmax.xlane.f32.xlu0 %v713_v35  ;;  %v753_v52 = vsel %vm737_vm9, %v2120_v29, inf  ;;  %vm744_vm1 = vmand %vm728_vm10, %vm604_vm3  ;;  %v1606_v15 = vmov inf   ;;  %vm682_vm9 = vcmp.eq.s32.totalorder %v2397_v42, %v1864_v22 }
 0x10f   :  { %v534_v30 = vmul.f32 %v533_v9, %v2284_v55  ;;  %v580_v2 = vsub.f32 1.5, %v579_v0  ;;  %v760_v37 = vsel %vm744_vm1, %v2057_v25, inf  ;;  %vm694_vm10 = vmand %vm678_vm6, %vm604_vm3 }
 0x110   :  { %v710_v29 = vsel %vm694_vm10, %v2253_v47, -inf  ;;  %vm698_vm1 = vmand %vm682_vm9, %vm604_vm3 }
 0x111   :  { %v536_v11 = vsel %vm535_vm12, %v2284_v55, %v534_v30  ;;  %v581_v4 = vmul.f32 %v1573_v39, %v580_v2  ;;  %vm725_vm12 = vmxor %vm677_vm11, %vm1605_vm4  ;;  %vm30_vm11 = vcmask 7168  }
 0x112   :  { %v539_v33 = vsel %vm537_vm14, %v538_v60, %v536_v11  ;;  %vm701_vm14 = vmand %vm685_vm7, %vm604_vm3  ;;  %51 = vst.msk [vmem:[#allocation3 + $0x20] sm:$0xff] %vm30_vm11, %v1606_v15 }
 0x113   :  { %599 = vst [vmem:[#allocation4 + $0x58] sm:$0xff] %v539_v33  ;;  %v582_v5 = vmul.f32 %v581_v4, %v2311_v14  ;;  %v717_v25 = vsel %vm701_vm14, %v2199_v45, -inf  ;;  %vm741_vm0 = vmand %vm725_vm12, %vm604_vm3  ;;  %vm686_vm14 = vcmp.eq.s32.totalorder %v669_v18, %v1864_v22 }
 0x114   :  { %v757_v49 = vsel %vm741_vm0, %v2149_v40, inf  ;;  %47 = vst.msk [vmem:[#allocation3] sm:$0xff] %vm30_vm11, %v1606_v15  ;;  %v714_v40 = vsel %vm698_vm1, %v2284_v55, -inf  ;;  %vm732_vm12 = vmxor %vm684_vm5, %vm1605_vm4 }
 0x115   :  { %v584_v1 = vsel %vm583_vm13, %v2311_v14, %v582_v5  ;;  %868 = vmin.xlane.f32.xlu1 %v753_v52  ;;  %882 = vmin.xlane.f32.xlu2 %v760_v37  ;;  %vm726_vm13 = vmxor %vm678_vm6, %vm1605_vm4  ;;  %48 = vst.msk [vmem:[#allocation3 + $0x8] sm:$0xff] %vm30_vm11, %v1606_v15 }
 0x116   :  { %v587_v61 = vsel %vm585_vm2, %v586_v48, %v584_v1  ;;  %884 = vmin.xlane.f32.xlu0 %v761_v56  ;;  %49 = vst.msk [vmem:[#allocation3 + $0x10] sm:$0xff] %vm30_vm11, %v1606_v15  ;;  %vm742_vm2 = vmand %vm726_vm13, %vm604_vm3 }
 0x117   :  { %603 = vst [vmem:[#allocation4 + $0x78] sm:$0xff] %v587_v61  ;;  %v758_v19 = vsel %vm742_vm2, %v2253_v47, inf  ;;  %vm730_vm6 = vmxor %vm682_vm9, %vm1605_vm4 }
 0x118   :  { %50 = vst.msk [vmem:[#allocation3 + $0x18] sm:$0xff] %vm30_vm11, %v1606_v15  ;;  %vm746_vm15 = vmand %vm730_vm6, %vm604_vm3  ;;  %1471 = dma.vmem_to_hbm [thread:$0]  %s1464_s13, 2048, %s1466_s11, [#allocation5], %s1609_s14, %s1609_s14, %s1610_s15  }
 0x119   :  { %52 = vst.msk [vmem:[#allocation3 + $0x28] sm:$0xff] %vm30_vm11, %v1606_v15  ;;  %v762_v47 = vsel %vm746_vm15, %v2284_v55, inf  ;;  %vm748_vm10 = vmand %vm732_vm12, %vm604_vm3  ;;  %v1607_v55 = vmov -inf  }
 0x11a   :  { %53 = vst.msk [vmem:[#allocation3 + $0x30] sm:$0xff] %vm30_vm11, %v1606_v15  ;;  %v764_v54 = vsel %vm748_vm10, %v2085_v62, inf  ;;  %vm733_vm5 = vmxor %vm685_vm7, %vm1605_vm4 }
 0x11b   :  { %54 = vst.msk [vmem:[#allocation3 + $0x38] sm:$0xff] %vm30_vm11, %v1606_v15  ;;  %vm749_vm8 = vmand %vm733_vm5, %vm604_vm3  ;;  %v848_v34 = vld [vmem:[#allocation3] sm:$0xff] }
 0x11c   :  { %55 = vst.msk [vmem:[#allocation3 + $0x40] sm:$0xff] %vm30_vm11, %v1606_v15  ;;  %v765_v62 = vsel %vm749_vm8, %v2199_v45, inf  ;;  %vm702_vm7 = vmand %vm686_vm14, %vm604_vm3  ;;  %v852_v45 = vld [vmem:[#allocation3 + $0x20] sm:$0xff] }
 0x11d   :  { %811 = vmax.xlane.f32.xlu1 %v717_v25  ;;  %876 = vmin.xlane.f32.xlu2 %v757_v49  ;;  %56 = vst.msk [vmem:[#allocation3 + $0x48] sm:$0xff] %vm30_vm11, %v1606_v15  ;;  %v718_v63 = vsel %vm702_vm7, %v2311_v14, -inf  ;;  %vm734_vm0 = vmxor %vm686_vm14, %vm1605_vm4  ;;  %v849_v25 = vld [vmem:[#allocation3 + $0x8] sm:$0xff] }
 0x11e   :  { %797 = vmax.xlane.f32.xlu0 %v710_v29  ;;  %57 = vst.msk [vmem:[#allocation3 + $0x50] sm:$0xff] %vm30_vm11, %v1606_v15  ;;  %vm750_vm9 = vmand %vm734_vm0, %vm604_vm3 }
 0x11f   :  { %58 = vst.msk [vmem:[#allocation3 + $0x58] sm:$0xff] %vm30_vm11, %v1606_v15  ;;  %v766_v8 = vsel %vm750_vm9, %v2311_v14, inf }
 0x120   :  { %59 = vst.msk [vmem:[#allocation3 + $0x60] sm:$0xff] %vm30_vm11, %v1606_v15  ;;  %v853_v37 = vld [vmem:[#allocation3 + $0x28] sm:$0xff] }
 0x121   :  { %60 = vst.msk [vmem:[#allocation3 + $0x68] sm:$0xff] %vm30_vm11, %v1606_v15 }
 0x122   :  { %61 = vst.msk [vmem:[#allocation3 + $0x70] sm:$0xff] %vm30_vm11, %v1606_v15 }
 0x123   :  { %62 = vst.msk [vmem:[#allocation3 + $0x78] sm:$0xff] %vm30_vm11, %v1606_v15  ;;  %v856_v42 = vld [vmem:[#allocation3 + $0x40] sm:$0xff] }
 0x124   :  { %31 = vst.msk [vmem:[#allocation2] sm:$0xff] %vm30_vm11, %v1607_v55 }
 0x125   :  { %805 = vmax.xlane.f32.xlu1 %v714_v40  ;;  %789 = vmax.xlane.f32.xlu2 %v706_v36  ;;  %32 = vst.msk [vmem:[#allocation2 + $0x8] sm:$0xff] %vm30_vm11, %v1607_v55 }
 0x126   :  { %878 = vmin.xlane.f32.xlu0 %v758_v19  ;;  %33 = vst.msk [vmem:[#allocation2 + $0x10] sm:$0xff] %vm30_vm11, %v1607_v55 }
 0x127   :  { %34 = vst.msk [vmem:[#allocation2 + $0x18] sm:$0xff] %vm30_vm11, %v1607_v55 }
 0x128   :  { %35 = vst.msk [vmem:[#allocation2 + $0x20] sm:$0xff] %vm30_vm11, %v1607_v55 }
 0x129   :  { %36 = vst.msk [vmem:[#allocation2 + $0x28] sm:$0xff] %vm30_vm11, %v1607_v55 }
 0x12a   :  { %37 = vst.msk [vmem:[#allocation2 + $0x30] sm:$0xff] %vm30_vm11, %v1607_v55 }
 0x12b   :  { %38 = vst.msk [vmem:[#allocation2 + $0x38] sm:$0xff] %vm30_vm11, %v1607_v55  ;;  %v767_v46 = vld [vmem:[#allocation2] sm:$0xff] }
 0x12c   :  { %39 = vst.msk [vmem:[#allocation2 + $0x40] sm:$0xff] %vm30_vm11, %v1607_v55  ;;  %v768_v13 = vld [vmem:[#allocation2 + $0x8] sm:$0xff] }
 0x12d   :  { %886 = vmin.xlane.f32.xlu1 %v762_v47  ;;  %870 = vmin.xlane.f32.xlu2 %v754_v41  ;;  %40 = vst.msk [vmem:[#allocation2 + $0x48] sm:$0xff] %vm30_vm11, %v1607_v55  ;;  %v769_v18 = vld [vmem:[#allocation2 + $0x10] sm:$0xff] }
 0x12e   :  { %890 = vmin.xlane.f32.xlu0 %v764_v54  ;;  %41 = vst.msk [vmem:[#allocation2 + $0x50] sm:$0xff] %vm30_vm11, %v1607_v55 }
 0x12f   :  { %42 = vst.msk [vmem:[#allocation2 + $0x58] sm:$0xff] %vm30_vm11, %v1607_v55  ;;  %v771_v16 = vld [vmem:[#allocation2 + $0x20] sm:$0xff] }
 0x130   :  { %43 = vst.msk [vmem:[#allocation2 + $0x60] sm:$0xff] %vm30_vm11, %v1607_v55  ;;  %v772_v9 = vld [vmem:[#allocation2 + $0x28] sm:$0xff] }
 0x131   :  { %44 = vst.msk [vmem:[#allocation2 + $0x68] sm:$0xff] %vm30_vm11, %v1607_v55 }
 0x132   :  { %45 = vst.msk [vmem:[#allocation2 + $0x70] sm:$0xff] %vm30_vm11, %v1607_v55 }
 0x133   :  { %46 = vst.msk [vmem:[#allocation2 + $0x78] sm:$0xff] %vm30_vm11, %v1607_v55  ;;  %v775_v20 = vld [vmem:[#allocation2 + $0x40] sm:$0xff] }
 0x134   :  { %v860_v55 = vld [vmem:[#allocation3 + $0x60] sm:$0xff] }
 0x135   :  { %892 = vmin.xlane.f32.xlu1 %v765_v62  ;;  %813 = vmax.xlane.f32.xlu2 %v718_v63 }
 0x137   :  { %v779_v61 = vld [vmem:[#allocation2 + $0x60] sm:$0xff] }
 0x138   :  { %v780_v62 = vld [vmem:[#allocation2 + $0x68] sm:$0xff] }
 0x13a   :  { %v784_v12 = vpop.xlane.xlu2 %783 }
 0x13b   :  { %v873_v10 = vpop.xlane.xlu0 %872  ;;  %v815_v38 = vmax.f32 %v767_v46, %v784_v12 }
 0x13c   :  { %v900_v22 = vmin.f32 %v852_v45, %v873_v10 }
 0x13d   :  { %894 = vmin.xlane.f32.xlu2 %v766_v8  ;;  %832 = vst.msk [vmem:[#allocation2] sm:$0xff] %vm30_vm11, %v815_v38  ;;  %v776_v38 = vld [vmem:[#allocation2 + $0x48] sm:$0xff] }
 0x13e   :  { %916 = vst.msk [vmem:[#allocation3 + $0x20] sm:$0xff] %vm30_vm11, %v900_v22  ;;  %v773_v22 = vld [vmem:[#allocation2 + $0x30] sm:$0xff] }
 0x142   :  { %v792_v28 = vpop.xlane.xlu2 %791 }
 0x143   :  { %v819_v26 = vmax.f32 %v771_v16, %v792_v28  ;;  %v777_v16 = vld [vmem:[#allocation2 + $0x50] sm:$0xff] }
 0x144   :  { %v931_v32 = vld [vmem:[#allocation2] sm:$0xff] }
 0x145   :  { %v800_v23 = vpop.xlane.xlu1 %799  ;;  %836 = vst.msk [vmem:[#allocation2 + $0x20] sm:$0xff] %vm30_vm11, %v819_v26  ;;  %v947_v14 = vmax.f32 %v931_v32, 0.0 }
 0x146   :  { %v823_v59 = vmax.f32 %v775_v20, %v800_v23 }
 0x147   :  { %1574 = vrsqrt.f32 %v947_v14  ;;  %vm970_vm3 = vcmp.eq.f32.partialorder %v947_v14, inf  ;;  %v973_v17 = vand.u32 2147483648, %v947_v14  ;;  %vm972_vm13 = vcmp.eq.f32.partialorder %v947_v14, 0.0 }
 0x148   :  { %840 = vst.msk [vmem:[#allocation2 + $0x40] sm:$0xff] %vm30_vm11, %v823_v59  ;;  %v850_v59 = vld [vmem:[#allocation3 + $0x10] sm:$0xff] }
 0x14a   :  { %v865_v39 = vpop.xlane.xlu2 %864 }
 0x14b   :  { %v896_v24 = vmin.f32 %v848_v34, %v865_v39  ;;  %v857_v34 = vld [vmem:[#allocation3 + $0x48] sm:$0xff]  ;;  %v858_v39 = vld [vmem:[#allocation3 + $0x50] sm:$0xff] }
 0x14d   :  { %912 = vst.msk [vmem:[#allocation3] sm:$0xff] %vm30_vm11, %v896_v24  ;;  %v1575_v31 = vpop.eup %1574 }
 0x14e   :  { %v964_v3 = vmul.f32 %v1575_v31, %v947_v14 }
 0x150   :  { %v965_v43 = vmul.f32 %v1575_v31, %v964_v3 }
 0x152   :  { %v966_v41 = vmul.f32 0.5, %v965_v43 }
 0x153   :  { %v786_v36 = vpop.xlane.xlu0 %785 }
 0x154   :  { %v816_v7 = vmax.f32 %v768_v13, %v786_v36  ;;  %v1155_v27 = vld [vmem:[#allocation3] sm:$0xff]  ;;  %v967_v51 = vsub.f32 1.5, %v966_v41  ;;  %v774_v41 = vld [vmem:[#allocation2 + $0x38] sm:$0xff] }
 0x155   :  { %1576 = vrsqrt.f32 %v1155_v27  ;;  %vm1178_vm4 = vcmp.eq.f32.partialorder %v1155_v27, inf  ;;  %v1181_v5 = vand.u32 2147483648, %v1155_v27  ;;  %vm1180_vm1 = vcmp.eq.f32.partialorder %v1155_v27, 0.0 }
 0x156   :  { %833 = vst.msk [vmem:[#allocation2 + $0x8] sm:$0xff] %vm30_vm11, %v816_v7  ;;  %v968_v21 = vmul.f32 %v1575_v31, %v967_v51  ;;  %v781_v7 = vld [vmem:[#allocation2 + $0x70] sm:$0xff] }
 0x158   :  { %v969_v30 = vmul.f32 %v968_v21, %v947_v14  ;;  %v778_v21 = vld [vmem:[#allocation2 + $0x58] sm:$0xff] }
 0x15a   :  { %v971_v4 = vsel %vm970_vm3, %v947_v14, %v969_v30 }
 0x15b   :  { %v1577_v53 = vpop.eup %1576  ;;  %v974_v52 = vsel %vm972_vm13, %v973_v17, %v971_v4  ;;  %v861_v17 = vld [vmem:[#allocation3 + $0x68] sm:$0xff] }
 0x15c   :  { %v881_v50 = vpop.xlane.xlu1 %880  ;;  %v1172_v58 = vmul.f32 %v1577_v53, %v1155_v27 }
 0x15d   :  { %v904_v57 = vmin.f32 %v856_v42, %v881_v50 }
 0x15e   :  { %v1173_v44 = vmul.f32 %v1577_v53, %v1172_v58 }
 0x15f   :  { %920 = vst.msk [vmem:[#allocation3 + $0x40] sm:$0xff] %vm30_vm11, %v904_v57 }
 0x160   :  { %v1174_v0 = vmul.f32 0.5, %v1173_v44  ;;  %v1611_v44 = vmov 0.0  }
 0x161   :  { %1444 = vst.msk [vmem:[%s2669_s7 + $0x8] sm:$0xff] %vm30_vm11, %v1611_v44 }
 0x162   :  { %v1175_v2 = vsub.f32 1.5, %v1174_v0  ;;  %v770_v0 = vld [vmem:[#allocation2 + $0x18] sm:$0xff]  ;;  %1445 = vst.msk [vmem:[%s2669_s7 + $0x10] sm:$0xff] %vm30_vm11, %v1611_v44 }
 0x163   :  { %v794_v35 = vpop.xlane.xlu0 %793  ;;  %1446 = vst.msk [vmem:[%s2669_s7 + $0x18] sm:$0xff] %vm30_vm11, %v1611_v44 }
 0x164   :  { %v820_v60 = vmax.f32 %v772_v9, %v794_v35  ;;  %v1176_v11 = vmul.f32 %v1577_v53, %v1175_v2  ;;  %v855_v9 = vld [vmem:[#allocation3 + $0x38] sm:$0xff]  ;;  %1447 = vst.msk [vmem:[%s2669_s7 + $0x20] sm:$0xff] %vm30_vm11, %v1611_v44 }
 0x165   :  { %1448 = vst.msk [vmem:[%s2669_s7 + $0x28] sm:$0xff] %vm30_vm11, %v1611_v44 }
 0x166   :  { %837 = vst.msk [vmem:[#allocation2 + $0x28] sm:$0xff] %vm30_vm11, %v820_v60  ;;  %v1177_v33 = vmul.f32 %v1176_v11, %v1155_v27 }
 0x167   :  { %1449 = vst.msk [vmem:[%s2669_s7 + $0x30] sm:$0xff] %vm30_vm11, %v1611_v44 }
 0x168   :  { %v1179_v48 = vsel %vm1178_vm4, %v1155_v27, %v1177_v33  ;;  %v854_v27 = vld [vmem:[#allocation3 + $0x30] sm:$0xff]  ;;  %v859_v33 = vld [vmem:[#allocation3 + $0x58] sm:$0xff]  ;;  %1450 = vst.msk [vmem:[%s2669_s7 + $0x38] sm:$0xff] %vm30_vm11, %v1611_v44 }
 0x169   :  { %v1182_v6 = vsel %vm1180_vm1, %v1181_v5, %v1179_v48  ;;  %v851_v5 = vld [vmem:[#allocation3 + $0x18] sm:$0xff]  ;;  %1451 = vst.msk [vmem:[%s2669_s7 + $0x40] sm:$0xff] %vm30_vm11, %v1611_v44 }
 0x16a   :  { %v1363_v1 = vsub.f32 %v974_v52, %v1182_v6  ;;  %1452 = vst.msk [vmem:[%s2669_s7 + $0x48] sm:$0xff] %vm30_vm11, %v1611_v44 }
 0x16b   :  { %1453 = vst.msk [vmem:[%s2669_s7 + $0x50] sm:$0xff] %vm30_vm11, %v1611_v44 }
 0x16c   :  { %v1379_v56 = vadd.f32 0.3, %v1363_v1  ;;  %1454 = vst.msk [vmem:[%s2669_s7 + $0x58] sm:$0xff] %vm30_vm11, %v1611_v44 }
 0x16d   :  { %1455 = vst.msk [vmem:[%s2669_s7 + $0x60] sm:$0xff] %vm30_vm11, %v1611_v44 }
 0x16e   :  { %v1395_v29 = vmax.f32 %v1379_v56, 0.0  ;;  %1456 = vst.msk [vmem:[%s2669_s7 + $0x68] sm:$0xff] %vm30_vm11, %v1611_v44 }
 0x16f   :  { %1457 = vst.msk [vmem:[%s2669_s7 + $0x70] sm:$0xff] %vm30_vm11, %v1611_v44 }
 0x170   :  { %v875_v49 = vpop.xlane.xlu1 %874  ;;  %v808_v40 = vpop.xlane.xlu2 %807  ;;  %1443 = vst.msk [vmem:[%s2669_s7] sm:$0xff] %vm30_vm11, %v1395_v29 }
 0x171   :  { %v901_v15 = vmin.f32 %v853_v37, %v875_v49  ;;  %v867_v19 = vpop.xlane.xlu0 %866  ;;  %v827_v47 = vmax.f32 %v779_v61, %v808_v40  ;;  %v862_v61 = vld [vmem:[#allocation3 + $0x70] sm:$0xff]  ;;  %1458 = vst.msk [vmem:[%s2669_s7 + $0x78] sm:$0xff] %vm30_vm11, %v1611_v44 }
 0x172   :  { %v897_v54 = vmin.f32 %v849_v25, %v867_v19  ;;  %v782_v25 = vld [vmem:[#allocation2 + $0x78] sm:$0xff] }
 0x173   :  { %917 = vst.msk [vmem:[#allocation3 + $0x28] sm:$0xff] %vm30_vm11, %v901_v15  ;;  %v863_v19 = vld [vmem:[#allocation3 + $0x78] sm:$0xff] }
 0x174   :  { %844 = vst.msk [vmem:[#allocation2 + $0x60] sm:$0xff] %vm30_vm11, %v827_v47 }
 0x175   :  { %913 = vst.msk [vmem:[#allocation3 + $0x8] sm:$0xff] %vm30_vm11, %v897_v54 }
 0x178   :  { %v788_v63 = vpop.xlane.xlu1 %787  ;;  %v889_v46 = vpop.xlane.xlu2 %888 }
 0x179   :  { %v817_v45 = vmax.f32 %v769_v18, %v788_v63  ;;  %v810_v8 = vpop.xlane.xlu0 %809  ;;  %v908_v10 = vmin.f32 %v860_v55, %v889_v46 }
 0x17a   :  { %v828_v12 = vmax.f32 %v780_v62, %v810_v8 }
 0x17b   :  { %834 = vst.msk [vmem:[#allocation2 + $0x10] sm:$0xff] %vm30_vm11, %v817_v45 }
 0x17c   :  { %924 = vst.msk [vmem:[#allocation3 + $0x60] sm:$0xff] %vm30_vm11, %v908_v10 }
 0x17d   :  { %845 = vst.msk [vmem:[#allocation2 + $0x68] sm:$0xff] %vm30_vm11, %v828_v12 }
 0x180   :  { %v796_v28 = vpop.xlane.xlu1 %795  ;;  %v802_v26 = vpop.xlane.xlu2 %801 }
 0x181   :  { %v821_v20 = vmax.f32 %v773_v22, %v796_v28  ;;  %v804_v32 = vpop.xlane.xlu0 %803  ;;  %v824_v23 = vmax.f32 %v776_v38, %v802_v26 }
 0x182   :  { %v825_v14 = vmax.f32 %v777_v16, %v804_v32 }
 0x183   :  { %838 = vst.msk [vmem:[#allocation2 + $0x30] sm:$0xff] %vm30_vm11, %v821_v20 }
 0x184   :  { %841 = vst.msk [vmem:[#allocation2 + $0x48] sm:$0xff] %vm30_vm11, %v824_v23 }
 0x185   :  { %842 = vst.msk [vmem:[#allocation2 + $0x50] sm:$0xff] %vm30_vm11, %v825_v14 }
 0x188   :  { %v869_v24 = vpop.xlane.xlu1 %868  ;;  %v883_v3 = vpop.xlane.xlu2 %882 }
 0x189   :  { %v898_v31 = vmin.f32 %v850_v59, %v869_v24  ;;  %v885_v13 = vpop.xlane.xlu0 %884  ;;  %v905_v36 = vmin.f32 %v857_v34, %v883_v3 }
 0x18a   :  { %v906_v43 = vmin.f32 %v858_v39, %v885_v13 }
 0x18b   :  { %914 = vst.msk [vmem:[#allocation3 + $0x10] sm:$0xff] %vm30_vm11, %v898_v31 }
 0x18c   :  { %921 = vst.msk [vmem:[#allocation3 + $0x48] sm:$0xff] %vm30_vm11, %v905_v36 }
 0x18d   :  { %922 = vst.msk [vmem:[#allocation3 + $0x50] sm:$0xff] %vm30_vm11, %v906_v43 }
 0x190   :  { %v812_v42 = vpop.xlane.xlu1 %811  ;;  %v877_v51 = vpop.xlane.xlu2 %876 }
 0x191   :  { %v829_v50 = vmax.f32 %v781_v7, %v812_v42  ;;  %v798_v53 = vpop.xlane.xlu0 %797  ;;  %v902_v57 = vmin.f32 %v854_v27, %v877_v51 }
 0x192   :  { %v822_v58 = vmax.f32 %v774_v41, %v798_v53 }
 0x193   :  { %846 = vst.msk [vmem:[#allocation2 + $0x70] sm:$0xff] %vm30_vm11, %v829_v50 }
 0x194   :  { %918 = vst.msk [vmem:[#allocation3 + $0x30] sm:$0xff] %vm30_vm11, %v902_v57 }
 0x195   :  { %839 = vst.msk [vmem:[#allocation2 + $0x38] sm:$0xff] %vm30_vm11, %v822_v58 }
 0x198   :  { %v806_v35 = vpop.xlane.xlu1 %805  ;;  %v790_v60 = vpop.xlane.xlu2 %789 }
 0x199   :  { %v826_v30 = vmax.f32 %v778_v21, %v806_v35  ;;  %v879_v2 = vpop.xlane.xlu0 %878  ;;  %v818_v4 = vmax.f32 %v770_v0, %v790_v60 }
 0x19a   :  { %v903_v11 = vmin.f32 %v855_v9, %v879_v2 }
 0x19b   :  { %843 = vst.msk [vmem:[#allocation2 + $0x58] sm:$0xff] %vm30_vm11, %v826_v30 }
 0x19c   :  { %919 = vst.msk [vmem:[#allocation3 + $0x38] sm:$0xff] %vm30_vm11, %v903_v11 }
 0x19d   :  { %835 = vst.msk [vmem:[#allocation2 + $0x18] sm:$0xff] %vm30_vm11, %v818_v4 }
 0x1a0   :  { %v887_v48 = vpop.xlane.xlu1 %886  ;;  %v871_v1 = vpop.xlane.xlu2 %870 }
 0x1a1   :  { %v907_v52 = vmin.f32 %v859_v33, %v887_v48  ;;  %v891_v6 = vpop.xlane.xlu0 %890  ;;  %v899_v56 = vmin.f32 %v851_v5, %v871_v1 }
 0x1a2   :  { %v909_v37 = vmin.f32 %v861_v17, %v891_v6 }
 0x1a3   :  { %923 = vst.msk [vmem:[#allocation3 + $0x58] sm:$0xff] %vm30_vm11, %v907_v52 }
 0x1a4   :  { %925 = vst.msk [vmem:[#allocation3 + $0x68] sm:$0xff] %vm30_vm11, %v909_v37 }
 0x1a5   :  { %915 = vst.msk [vmem:[#allocation3 + $0x18] sm:$0xff] %vm30_vm11, %v899_v56 }
 0x1a8   :  { %v893_v49 = vpop.xlane.xlu1 %892  ;;  %v814_v15 = vpop.xlane.xlu2 %813 }
 0x1a9   :  { %v910_v29 = vmin.f32 %v862_v61, %v893_v49  ;;  %v830_v40 = vmax.f32 %v782_v25, %v814_v15 }
 0x1ab   :  { %926 = vst.msk [vmem:[#allocation3 + $0x70] sm:$0xff] %vm30_vm11, %v910_v29 }
 0x1ac   :  { %847 = vst.msk [vmem:[#allocation2 + $0x78] sm:$0xff] %vm30_vm11, %v830_v40 }
 0x1b0   :  { %v895_v47 = vpop.xlane.xlu2 %894 }
 0x1b1   :  { %v911_v54 = vmin.f32 %v863_v19, %v895_v47 }
 0x1b3   :  { %927 = vst.msk [vmem:[#allocation3 + $0x78] sm:$0xff] %vm30_vm11, %v911_v54 }
 0x1b4   :  { %1602 = dma.done.wait [#allocation5], 2048  }
 0x1b5   :  { %1603 = vsyncadd [#allocation5], 4294965248 }
 0x1b6   :  { %1480 = vsyncpa [#allocation5], 1 }

</bundles_post_ra>
